<compile_context>
chip_gen: v5e
topology: v5e:2x2
jax: 0.10.0
libtpu: 0.0.40
codegen_flags: <defaults>
</compile_context>

<pallas_src>
import functools
import math

import jax
import jax.numpy as jnp
from jax.experimental import pallas as pl
from jax.experimental.pallas import tpu as pltpu


def _basic1d_block_kernel(x_ref, w1_ref, b1_ref, w2_ref, b2_ref, o_ref, *, Ls):
    x = x_ref[...]                                   # (Cin_p, T), compute dtype
    T = x.shape[-1]
    cdt = x.dtype

    # Halo mask: lane 0 of every Ls-lane sample period is a zero halo.
    pos = jax.lax.broadcasted_iota(jnp.int32, (1, T), 1) % Ls
    is_real = pos != 0

    def conv3(inp, w_ref_):
        # inp: (C, T); w_ref_: (3, Cout_p, C). Taps k=0,1,2 multiply x[l-1], x[l], x[l+1].
        x_lm1 = pltpu.roll(inp, 1, 1)        # x[l-1]; halo zeros supply the conv padding
        x_lp1 = pltpu.roll(inp, T - 1, 1)    # x[l+1]
        acc = jnp.dot(w_ref_[1], inp, preferred_element_type=jnp.float32)
        acc = acc + jnp.dot(w_ref_[0], x_lm1, preferred_element_type=jnp.float32)
        acc = acc + jnp.dot(w_ref_[2], x_lp1, preferred_element_type=jnp.float32)
        return acc                            # (Cout_p, T) f32 accumulator

    # conv1 + folded BN + ReLU (f32 epilogue).
    y1 = jnp.maximum(conv3(x, w1_ref) + b1_ref[...], 0.0)
    # Re-zero halo lanes (conv1 output there is garbage) and drop to compute dtype.
    y1 = jnp.where(is_real, y1.astype(cdt), jnp.array(0, dtype=cdt))
    # conv2 + folded BN + ReLU.
    y2 = jnp.maximum(conv3(y1, w2_ref) + b2_ref[...], 0.0)
    o_ref[...] = y2.astype(o_ref.dtype)


def _round_up(a, m):
    return ((a + m - 1) // m) * m


def _chip_config():
    """Trace-time chip detection -> compute dtype, channel padding, VMEM budget."""
    kind = ""
    try:
        kind = jax.devices()[0].device_kind.lower()
    except Exception:
        pass
    is_v7 = ("v7" in kind) or ("tpu7" in kind) or ("7x" in kind)
    is_v6 = "v6" in kind
    is_v5e = ("v5e" in kind) or ("v5 lite" in kind) or ("v5lite" in kind)
    is_v5p = (not is_v5e) and ("v5" in kind)
    is_v4 = "v4" in kind

    if is_v7:
        # 64 MiB physical VMEM, 2 TensorCores/chip, bf16-native MXU.
        return dict(compute_dtype=jnp.bfloat16, pad=16,
                    vmem_limit=48 * 2**20, two_cores=True)
    if is_v6 or is_v5p:
        return dict(compute_dtype=jnp.bfloat16, pad=16,
                    vmem_limit=96 * 2**20, two_cores=is_v5p)
    if is_v5e or is_v4:
        # v5e: no bf16 VALU/EUP -> stay f32; raise the 16 MiB default scoped VMEM.
        return dict(compute_dtype=jnp.float32, pad=8,
                    vmem_limit=96 * 2**20, two_cores=is_v4)
    # Unknown part: conservative f32, keep the default scoped VMEM limit.
    return dict(compute_dtype=jnp.float32, pad=8, vmem_limit=None, two_cores=False)


def basic1d_block(x, w1, w2, bn1, bn2, eps=1e-5):
    """
    x  : (N, C_in, L)        float32
    w1 : (planes, C_in, 3)   PyTorch Conv1d weight layout (no bias)
    w2 : (planes, planes, 3)
    bn1/bn2 : dict with 'gamma','beta','mean','var' each (planes,)  (inference BN)
    """
    N, c_in, L = x.shape
    planes = w1.shape[0]
    f32 = jnp.float32

    cfg = _chip_config()
    cdt = cfg["compute_dtype"]
    pad = cfg["pad"]
    item = jnp.dtype(cdt).itemsize

    # ---- glue: fold BN (running stats) into conv weights + per-channel bias ----
    def fold(w, bn):
        scale = (bn["gamma"] / jnp.sqrt(bn["var"] + eps)).astype(f32)
        shift = bn["beta"].astype(f32) - bn["mean"].astype(f32) * scale
        return w.astype(f32) * scale[:, None, None], shift

    w1_eff, bias1 = fold(w1, bn1)            # (planes, c_in, 3), (planes,)
    w2_eff, bias2 = fold(w2, bn2)            # (planes, planes, 3), (planes,)

    # ---- glue: pad channels to the sublane tile of the compute dtype ----
    cin_p = _round_up(c_in, pad)
    p_p = _round_up(planes, pad)

    def pack_w(w_eff, cout, cout_p, cin, cin_p_):
        wp = jnp.zeros((cout_p, cin_p_, 3), f32).at[:cout, :cin, :].set(w_eff)
        # Per-tap slabs: (3, Cout_p, Cin_p); tap k multiplies x[l + k - 1].
        return jnp.transpose(wp, (2, 0, 1)).astype(cdt)

    w1_s = pack_w(w1_eff, planes, p_p, c_in, cin_p)       # (3, p_p, cin_p)
    w2_s = pack_w(w2_eff, planes, p_p, planes, p_p)       # (3, p_p, p_p)
    b1_s = jnp.zeros((p_p, 1), f32).at[:planes, 0].set(bias1)
    b2_s = jnp.zeros((p_p, 1), f32).at[:planes, 0].set(bias2)

    # ---- glue: block sizing (halo-packed samples, byte-budget-driven lanes) ----
    Ls = L + 1                                     # 1 zero-halo lane per sample
    nb_min = 128 // math.gcd(Ls, 128)              # min samples/block for lane-dense tiles
    unit_lanes = nb_min * Ls                       # multiple of 128 by construction

    io_per_lane = (cin_p + p_p) * item                              # input + output block
    per_lane = (2 * io_per_lane                                     # double-buffered I/O
                + 3 * (cin_p + p_p) * item                          # x / y1 + their rolls
                + 3 * p_p * 4 + 8)                                  # f32 accumulators etc.
    vmem_budget = int(0.6 * (cfg["vmem_limit"] or 14 * 2**20))
    lanes_want = max(1024, (2 * 2**20) // io_per_lane)              # >= ~2 MiB I/O / step
    lanes_cap = max(unit_lanes, vmem_budget // per_lane)
    units_budget = max(1, min(lanes_want, lanes_cap) // unit_lanes)
    units_needed = -(-N // nb_min)
    units = max(1, min(units_budget, units_needed))
    if cfg["two_cores"] and units_needed >= 2:
        units = min(units, (units_needed + 1) // 2)   # >= 2 grid steps feeds both TCs
    nb = units * nb_min
    n_pad = _round_up(N, nb)
    lanes = nb * Ls

    # ---- glue: pack batch into lanes with halos: (N, C, L) -> (Cin_p, N_pad*(L+1)) ----
    x_p = jnp.zeros((n_pad, cin_p, Ls), cdt).at[:N, :c_in, 1:].set(x.astype(cdt))
    x_packed = jnp.transpose(x_p, (1, 0, 2)).reshape(cin_p, n_pad * Ls)

    kernel = functools.partial(_basic1d_block_kernel, Ls=Ls)
    out_packed = pl.pallas_call(
        kernel,
        out_shape=jax.ShapeDtypeStruct((p_p, n_pad * Ls), cdt),
        grid=(n_pad // nb,),
        in_specs=[
            pl.BlockSpec((cin_p, lanes), lambda i: (0, i)),      # activations (nb samples)
            pl.BlockSpec((3, p_p, cin_p), lambda i: (0, 0, 0)),  # conv1 per-tap weights
            pl.BlockSpec((p_p, 1), lambda i: (0, 0)),            # conv1 folded bias
            pl.BlockSpec((3, p_p, p_p), lambda i: (0, 0, 0)),    # conv2 per-tap weights
            pl.BlockSpec((p_p, 1), lambda i: (0, 0)),            # conv2 folded bias
        ],
        out_specs=pl.BlockSpec((p_p, lanes), lambda i: (0, i)),
        compiler_params=pltpu.CompilerParams(
            dimension_semantics=("parallel",),            # batch-block axis
            vmem_limit_bytes=cfg["vmem_limit"]),
    )(x_packed, w1_s, b1_s, w2_s, b2_s)

    # ---- glue: unpack (drop halos, batch padding, channel padding) ----
    out = out_packed.reshape(p_p, n_pad, Ls)[:, :N, 1:]
    return jnp.transpose(out, (1, 0, 2))[:, :planes, :].astype(x.dtype)


# -------------------- pure-JAX reference (for sanity check) --------------------
def _reference(x, w1, w2, bn1, bn2, eps=1e-5):
    def conv(inp, w):
        return jax.lax.conv_general_dilated(
            inp, w, window_strides=(1,), padding=[(1, 1)],
            dimension_numbers=("NCH", "OIH", "NCH"))

    def bn_relu(y, bn):
        scale = bn["gamma"] / jnp.sqrt(bn["var"] + eps)
        shift = bn["beta"] - bn["mean"] * scale
        return jnp.maximum(y * scale[None, :, None] + shift[None, :, None], 0.0)

    y = bn_relu(conv(x, w1), bn1)
    y = bn_relu(conv(y, w2), bn2)
    return y


if __name__ == "__main__":
    key = jax.random.PRNGKey(0)
    k = jax.random.split(key, 10)

    N, inplanes, planes, L = 2, 4, 8, 16

    x = jax.random.normal(k[0], (N, inplanes, L), dtype=jnp.float32)

    w1 = 0.1 * jax.random.normal(k[1], (planes, inplanes, 3), dtype=jnp.float32)
    w2 = 0.1 * jax.random.normal(k[2], (planes, planes, 3), dtype=jnp.float32)

    bn1 = {
        "gamma": 1.0 + 0.1 * jax.random.normal(k[3], (planes,), dtype=jnp.float32),
        "beta": 0.1 * jax.random.normal(k[4], (planes,), dtype=jnp.float32),
        "mean": 0.1 * jax.random.normal(k[5], (planes,), dtype=jnp.float32),
        "var": jnp.abs(jax.random.normal(k[6], (planes,), dtype=jnp.float32)) + 0.5,
    }
    bn2 = {
        "gamma": 1.0 + 0.1 * jax.random.normal(k[7], (planes,), dtype=jnp.float32),
        "beta": 0.1 * jax.random.normal(k[8], (planes,), dtype=jnp.float32),
        "mean": 0.1 * jax.random.normal(k[9], (planes,), dtype=jnp.float32),
        "var": jnp.full((planes,), 1.3, dtype=jnp.float32),
    }

    out = jax.block_until_ready(basic1d_block(x, w1, w2, bn1, bn2))
    ref = _reference(x, w1, w2, bn1, bn2)
    assert out.shape == (N, planes, L), out.shape

    # bf16 MXU path (v6e/v5p/v7x) needs wider tolerances than the f32 path (v5e).
    if _chip_config()["compute_dtype"] == jnp.bfloat16:
        rtol, atol = 2e-2, 2e-2
    else:
        rtol, atol = 1e-4, 1e-4
    assert jnp.allclose(out, ref, rtol=rtol, atol=atol), \
        float(jnp.max(jnp.abs(out - ref)))

    print("KERNEL_OK")
</pallas_src>

<mosaic_0001>
module attributes {stable_mosaic.version = 11 : i64} {
  func.func @_basic1d_block_kernel(%arg0: i32, %arg1: memref<8x2176xf32, #tpu.memory_space<vmem>>, %arg2: memref<3x8x8xf32, #tpu.memory_space<vmem>>, %arg3: memref<8x1xf32, #tpu.memory_space<vmem>>, %arg4: memref<3x8x8xf32, #tpu.memory_space<vmem>>, %arg5: memref<8x1xf32, #tpu.memory_space<vmem>>, %arg6: memref<8x2176xf32, #tpu.memory_space<vmem>>) attributes {dimension_semantics = [#tpu.dimension_semantics<parallel>], iteration_bounds = array<i64: 1>, scalar_prefetch = 0 : i64, scratch_operands = 0 : i64, tpu.core_type = #tpu.core_type<tc>, window_params = [{transform_indices = @transform_0, window_bounds = array<i64: 8, 2176>}, {pipeline_mode = #tpu.pipeline_mode<synchronous>, transform_indices = @transform_1, window_bounds = array<i64: 3, 8, 8>}, {pipeline_mode = #tpu.pipeline_mode<synchronous>, transform_indices = @transform_2, window_bounds = array<i64: 8, 1>}, {pipeline_mode = #tpu.pipeline_mode<synchronous>, transform_indices = @transform_3, window_bounds = array<i64: 3, 8, 8>}, {pipeline_mode = #tpu.pipeline_mode<synchronous>, transform_indices = @transform_4, window_bounds = array<i64: 8, 1>}, {transform_indices = @transform_5, window_bounds = array<i64: 8, 2176>}]} {
    %c0 = arith.constant 0 : index
    %c0_0 = arith.constant 0 : index
    %0 = vector.load %arg1[%c0, %c0_0] : memref<8x2176xf32, #tpu.memory_space<vmem>>, vector<8x2176xf32>
    %1 = tpu.iota {dimensions = array<i32: 1>} : vector<1x2176xi32>
    %c17_i32 = arith.constant 17 : i32
    %c0_i32 = arith.constant 0 : i32
    %2 = arith.cmpi eq, %c17_i32, %c0_i32 : i32
    %c1_i32 = arith.constant 1 : i32
    %3 = arith.select %2, %c1_i32, %c17_i32 : i32
    %4 = vector.broadcast %3 : i32 to vector<1x2176xi32>
    %5 = arith.remsi %1, %4 : vector<1x2176xi32>
    %c0_i32_1 = arith.constant 0 : i32
    %6 = vector.broadcast %c0_i32_1 : i32 to vector<1x2176xi32>
    %7 = arith.cmpi ne, %5, %6 : vector<1x2176xi32>
    %c0_i32_2 = arith.constant 0 : i32
    %8 = vector.broadcast %c0_i32_2 : i32 to vector<1x2176xi32>
    %9 = arith.cmpi slt, %5, %8 : vector<1x2176xi32>
    %c0_i32_3 = arith.constant 0 : i32
    %10 = arith.cmpi slt, %3, %c0_i32_3 : i32
    %11 = vector.broadcast %10 : i1 to vector<1x2176xi1>
    %12 = vector.broadcast %11 : vector<1x2176xi1> to vector<1x2176xi1>
    %13 = arith.xori %9, %12 : vector<1x2176xi1>
    %14 = arith.andi %13, %7 : vector<1x2176xi1>
    %15 = vector.broadcast %3 : i32 to vector<1x2176xi32>
    %16 = arith.addi %5, %15 : vector<1x2176xi32>
    %17 = arith.select %14, %16, %5 : vector<1x2176xi1>, vector<1x2176xi32>
    %c0_i32_4 = arith.constant 0 : i32
    %18 = vector.broadcast %c0_i32_4 : i32 to vector<1x2176xi32>
    %19 = arith.cmpi ne, %17, %18 : vector<1x2176xi32>
    %c1_i32_5 = arith.constant 1 : i32
    %20 = tpu.dynamic_rotate %0 by %c1_i32_5 dim 1 : vector<8x2176xf32>, i32 -> vector<8x2176xf32>
    %c2175_i32 = arith.constant 2175 : i32
    %21 = tpu.dynamic_rotate %0 by %c2175_i32 dim 1 : vector<8x2176xf32>, i32 -> vector<8x2176xf32>
    %c1 = arith.constant 1 : index
    %c0_6 = arith.constant 0 : index
    %c0_7 = arith.constant 0 : index
    %22 = vector.load %arg2[%c1, %c0_6, %c0_7] : memref<3x8x8xf32, #tpu.memory_space<vmem>>, vector<1x8x8xf32>
    %23 = vector.shape_cast %22 : vector<1x8x8xf32> to vector<8x8xf32>
    %cst = arith.constant dense<0.000000e+00> : vector<8x2176xf32>
    %24 = tpu.matmul %23, %0, %cst {dimension_numbers = #tpu.dot_dimension_numbers<[1], [0], [0], [1], [0, 0, 1, 1], [], []>} : vector<8x8xf32>, vector<8x2176xf32>, vector<8x2176xf32> -> vector<8x2176xf32>
    %c0_8 = arith.constant 0 : index
    %c0_9 = arith.constant 0 : index
    %c0_10 = arith.constant 0 : index
    %25 = vector.load %arg2[%c0_8, %c0_9, %c0_10] : memref<3x8x8xf32, #tpu.memory_space<vmem>>, vector<1x8x8xf32>
    %26 = vector.shape_cast %25 : vector<1x8x8xf32> to vector<8x8xf32>
    %cst_11 = arith.constant dense<0.000000e+00> : vector<8x2176xf32>
    %27 = tpu.matmul %26, %20, %cst_11 {dimension_numbers = #tpu.dot_dimension_numbers<[1], [0], [0], [1], [0, 0, 1, 1], [], []>} : vector<8x8xf32>, vector<8x2176xf32>, vector<8x2176xf32> -> vector<8x2176xf32>
    %28 = arith.addf %24, %27 : vector<8x2176xf32>
    %c2 = arith.constant 2 : index
    %c0_12 = arith.constant 0 : index
    %c0_13 = arith.constant 0 : index
    %29 = vector.load %arg2[%c2, %c0_12, %c0_13] : memref<3x8x8xf32, #tpu.memory_space<vmem>>, vector<1x8x8xf32>
    %30 = vector.shape_cast %29 : vector<1x8x8xf32> to vector<8x8xf32>
    %cst_14 = arith.constant dense<0.000000e+00> : vector<8x2176xf32>
    %31 = tpu.matmul %30, %21, %cst_14 {dimension_numbers = #tpu.dot_dimension_numbers<[1], [0], [0], [1], [0, 0, 1, 1], [], []>} : vector<8x8xf32>, vector<8x2176xf32>, vector<8x2176xf32> -> vector<8x2176xf32>
    %32 = arith.addf %28, %31 : vector<8x2176xf32>
    %c0_15 = arith.constant 0 : index
    %c0_16 = arith.constant 0 : index
    %33 = vector.load %arg3[%c0_15, %c0_16] : memref<8x1xf32, #tpu.memory_space<vmem>>, vector<8x1xf32>
    %34 = vector.broadcast %33 : vector<8x1xf32> to vector<8x2176xf32>
    %35 = arith.addf %32, %34 : vector<8x2176xf32>
    %cst_17 = arith.constant 0.000000e+00 : f32
    %36 = vector.broadcast %cst_17 : f32 to vector<8x2176xf32>
    %37 = arith.maximumf %35, %36 : vector<8x2176xf32>
    %cst_18 = arith.constant 0.000000e+00 : f32
    %38 = vector.shape_cast %19 : vector<1x2176xi1> to vector<1x2176xi1>
    %39 = vector.broadcast %38 : vector<1x2176xi1> to vector<8x2176xi1>
    %40 = vector.broadcast %cst_18 : f32 to vector<8x2176xf32>
    %41 = arith.select %39, %37, %40 : vector<8x2176xi1>, vector<8x2176xf32>
    %c1_i32_19 = arith.constant 1 : i32
    %42 = tpu.dynamic_rotate %41 by %c1_i32_19 dim 1 : vector<8x2176xf32>, i32 -> vector<8x2176xf32>
    %c2175_i32_20 = arith.constant 2175 : i32
    %43 = tpu.dynamic_rotate %41 by %c2175_i32_20 dim 1 : vector<8x2176xf32>, i32 -> vector<8x2176xf32>
    %c1_21 = arith.constant 1 : index
    %c0_22 = arith.constant 0 : index
    %c0_23 = arith.constant 0 : index
    %44 = vector.load %arg4[%c1_21, %c0_22, %c0_23] : memref<3x8x8xf32, #tpu.memory_space<vmem>>, vector<1x8x8xf32>
    %45 = vector.shape_cast %44 : vector<1x8x8xf32> to vector<8x8xf32>
    %cst_24 = arith.constant dense<0.000000e+00> : vector<8x2176xf32>
    %46 = tpu.matmul %45, %41, %cst_24 {dimension_numbers = #tpu.dot_dimension_numbers<[1], [0], [0], [1], [0, 0, 1, 1], [], []>} : vector<8x8xf32>, vector<8x2176xf32>, vector<8x2176xf32> -> vector<8x2176xf32>
    %c0_25 = arith.constant 0 : index
    %c0_26 = arith.constant 0 : index
    %c0_27 = arith.constant 0 : index
    %47 = vector.load %arg4[%c0_25, %c0_26, %c0_27] : memref<3x8x8xf32, #tpu.memory_space<vmem>>, vector<1x8x8xf32>
    %48 = vector.shape_cast %47 : vector<1x8x8xf32> to vector<8x8xf32>
    %cst_28 = arith.constant dense<0.000000e+00> : vector<8x2176xf32>
    %49 = tpu.matmul %48, %42, %cst_28 {dimension_numbers = #tpu.dot_dimension_numbers<[1], [0], [0], [1], [0, 0, 1, 1], [], []>} : vector<8x8xf32>, vector<8x2176xf32>, vector<8x2176xf32> -> vector<8x2176xf32>
    %50 = arith.addf %46, %49 : vector<8x2176xf32>
    %c2_29 = arith.constant 2 : index
    %c0_30 = arith.constant 0 : index
    %c0_31 = arith.constant 0 : index
    %51 = vector.load %arg4[%c2_29, %c0_30, %c0_31] : memref<3x8x8xf32, #tpu.memory_space<vmem>>, vector<1x8x8xf32>
    %52 = vector.shape_cast %51 : vector<1x8x8xf32> to vector<8x8xf32>
    %cst_32 = arith.constant dense<0.000000e+00> : vector<8x2176xf32>
    %53 = tpu.matmul %52, %43, %cst_32 {dimension_numbers = #tpu.dot_dimension_numbers<[1], [0], [0], [1], [0, 0, 1, 1], [], []>} : vector<8x8xf32>, vector<8x2176xf32>, vector<8x2176xf32> -> vector<8x2176xf32>
    %54 = arith.addf %50, %53 : vector<8x2176xf32>
    %c0_33 = arith.constant 0 : index
    %c0_34 = arith.constant 0 : index
    %55 = vector.load %arg5[%c0_33, %c0_34] : memref<8x1xf32, #tpu.memory_space<vmem>>, vector<8x1xf32>
    %56 = vector.broadcast %55 : vector<8x1xf32> to vector<8x2176xf32>
    %57 = arith.addf %54, %56 : vector<8x2176xf32>
    %cst_35 = arith.constant 0.000000e+00 : f32
    %58 = vector.broadcast %cst_35 : f32 to vector<8x2176xf32>
    %59 = arith.maximumf %57, %58 : vector<8x2176xf32>
    %c0_36 = arith.constant 0 : index
    %c0_37 = arith.constant 0 : index
    %60 = vector.load %arg6[%c0_36, %c0_37] : memref<8x2176xf32, #tpu.memory_space<vmem>>, vector<8x2176xf32>
    tpu.vector_store %arg6[%c0_36, %c0_37], %59 {strides = array<i32>} : memref<8x2176xf32, #tpu.memory_space<vmem>>, vector<8x2176xf32>,
    return
  }
  func.func @transform_0(%arg0: i32) -> (i32, i32) {
    %c0_i32 = arith.constant 0 : i32
    %c0_i32_0 = arith.constant 0 : i32
    return %c0_i32, %arg0 : i32, i32
  }
  func.func @transform_1(%arg0: i32) -> (i32, i32, i32) {
    %c0_i32 = arith.constant 0 : i32
    %c0_i32_0 = arith.constant 0 : i32
    %c0_i32_1 = arith.constant 0 : i32
    %c0_i32_2 = arith.constant 0 : i32
    return %c0_i32, %c0_i32_0, %c0_i32_1 : i32, i32, i32
  }
  func.func @transform_2(%arg0: i32) -> (i32, i32) {
    %c0_i32 = arith.constant 0 : i32
    %c0_i32_0 = arith.constant 0 : i32
    %c0_i32_1 = arith.constant 0 : i32
    return %c0_i32, %c0_i32_0 : i32, i32
  }
  func.func @transform_3(%arg0: i32) -> (i32, i32, i32) {
    %c0_i32 = arith.constant 0 : i32
    %c0_i32_0 = arith.constant 0 : i32
    %c0_i32_1 = arith.constant 0 : i32
    %c0_i32_2 = arith.constant 0 : i32
    return %c0_i32, %c0_i32_0, %c0_i32_1 : i32, i32, i32
  }
  func.func @transform_4(%arg0: i32) -> (i32, i32) {
    %c0_i32 = arith.constant 0 : i32
    %c0_i32_0 = arith.constant 0 : i32
    %c0_i32_1 = arith.constant 0 : i32
    return %c0_i32, %c0_i32_0 : i32, i32
  }
  func.func @transform_5(%arg0: i32) -> (i32, i32) {
    %c0_i32 = arith.constant 0 : i32
    %c0_i32_0 = arith.constant 0 : i32
    return %c0_i32, %arg0 : i32, i32
  }
}

</mosaic_0001>

<bundles_post_ra>
// kernel: tpu_custom_call.1
= control target key start
LH: loop header
LB: loop body
LE: loop exit
PB: predicated region body
PF: predicated region fallthrough
CT: control target
= control target key end

     0   :  { %10 = vsyncpa [#allocation3], 0  ;;  %s4838_s0 = inlined_call_operand.hbm [shape: f32[8,2176], index: 0, kind: input, shape index: {}]   ;;  %s4839_s1 = inlined_call_operand.hbm [shape: f32[3,8,8], index: 1, kind: input, shape index: {}]   ;;  %s4840_s2 = inlined_call_operand.vmem [shape: f32[8,1], index: 2, kind: input, shape index: {}]   ;;  %s4841_s3 = inlined_call_operand.hbm [shape: f32[3,8,8], index: 3, kind: input, shape index: {}]   ;;  %s4842_s4 = inlined_call_operand.vmem [shape: f32[8,1], index: 4, kind: input, shape index: {}]   ;;  %s4843_s5 = inlined_call_operand.hbm [shape: f32[8,2176], index: 5, kind: output, shape index: {}]  }
   0x1   :  { %11 = vsyncpa [#allocation6], 0  ;;  %s28_s20 = sshll.u32 %s4839_s1, 4  ;;  %s29_s20 = int_to_ptr.hbm [resolvable:$true] %s28_s20 }
   0x2   :  { %12 = vsyncpa [#allocation4], 0  ;;  %s3559_s21 = smov [#allocation5]   ;;  %s18_s25 = sshll.u32 %s4838_s0, 4  ;;  %s19_s25 = int_to_ptr.hbm [resolvable:$true] %s18_s25 }
   0x3   :  { %s30_s22 = sshll.u32 %s3559_s21, 4  ;;  %s3560_s26 = smov 128   ;;  %s31_s22 = int_to_ptr.vmem [resolvable:$true] %s30_s22 }
   0x4   :  { %s3561_s27 = smov 8   ;;  %s3562_s28 = smov [#allocation2]  }
   0x5   :  { %36 = dma.hbm_to_vmem [thread:$0]  %s29_s20, 384, %s31_s22, [#allocation6], %s3560_s26, %s3560_s26, %s3561_s27  }
   0x6   :  { %s20_s29 = sshll.u32 %s3562_s28, 4  ;;  %s43_s7 = sshll.u32 %s4841_s3, 4  ;;  %s21_s29 = int_to_ptr.vmem [resolvable:$true] %s20_s29  ;;  %s44_s7 = int_to_ptr.hbm [resolvable:$true] %s43_s7 }
   0x7   :  { %23 = dma.hbm_to_vmem [thread:$0]  %s19_s25, 2176, %s21_s29, [#allocation3]  }
   0x8   :  { %s3563_s1 = smov [#allocation7]  }
   0x9   :  { %s45_s8 = sshll.u32 %s3563_s1, 4  ;;  %s46_s8 = int_to_ptr.vmem [resolvable:$true] %s45_s8 }
   0xa   :  { %51 = dma.hbm_to_vmem [thread:$0]  %s44_s7, 384, %s46_s8, [#allocation6], %s3560_s26, %s3560_s26, %s3561_s27  }
   0xb   :  { %3553 = dma.done.wait [#allocation3], 2176  }
   0xc   :  { %3554 = vsyncadd [#allocation3], 4294965120 }
   0xd   :  { %3555 = dma.done.wait [#allocation6], 768  }
   0xe   :  { %3556 = vsyncadd [#allocation6], 4294966528  ;;  %v3607_v0 = vld [vmem:[#allocation2 + $0x48] sm:$0xff]  ;;  %v3609_v1 = vld [vmem:[#allocation2 + $0x50] sm:$0xff]  ;;  %s3564_s0 = smov 1   ;;  %s3565_s3 = smov 127   ;;  %v83_v32 = vlaneseq }
   0xf   :  { %v3611_v2 = vld [vmem:[#allocation2 + $0x8] sm:$0xff]  ;;  %v3309_v3 = vpack.i.bf16 %v3609_v1, %v3607_v0  ;;  %v3615_v4 = vld [vmem:[#allocation2 + $0x10] sm:$0xff]  ;;  %v3625_v8 = vld [vmem:[#allocation2] sm:$0xff]  ;;  %vm4858_vm1 = vcmask 64512   ;;  %s3160_s15 = sshll.u32 %s4843_s5, 4  ;;  %s3161_s15 = int_to_ptr.hbm [resolvable:$true] %s3160_s15 }
  0x10   :  { %v3299_v5 = vpack.i.bf16 %v3615_v4, %v3611_v2  ;;  %v3620_v6 = vld [vmem:[#allocation2 + $0x68] sm:$0xff]  ;;  %v3623_v7 = vld [vmem:[#allocation2 + $0x70] sm:$0xff]  ;;  %v3627_v9 = vld [vmem:[#allocation2 + $0x80] sm:$0xff]  ;;  %v3339_v26 = vpack.i.bf16 %v3611_v2, %v3625_v8  ;;  %v3694_v33 = vand.u32 127, %v83_v32 }
  0x11   :  { %3310 = vrot.lane.b32.xlu1 %v3309_v3, %s3564_s0  ;;  %v3629_v10 = vld [vmem:[#allocation2 + $0x28] sm:$0xff]  ;;  %v3631_v11 = vld [vmem:[#allocation2 + $0x30] sm:$0xff]  ;;  %v3319_v12 = vpack.i.bf16 %v3627_v9, %v3625_v8  ;;  %v3314_v13 = vpack.i.bf16 %v3623_v7, %v3620_v6  ;;  %v3642_v15 = vld [vmem:[#allocation2 + $0x40] sm:$0xff] }
  0x12   :  { %3300 = vrot.lane.b32.xlu0 %v3299_v5, %s3564_s0  ;;  %v3304_v14 = vpack.i.bf16 %v3631_v11, %v3629_v10  ;;  %v3644_v16 = vld [vmem:[#allocation2 + $0x58] sm:$0xff]  ;;  %v3648_v18 = vld [vmem:[#allocation2 + $0x20] sm:$0xff]  ;;  %v3349_v27 = vpack.i.bf16 %v3607_v0, %v3642_v15  ;;  %vm4861_vm0 = vcmp.lt.s32.totalorder %v3694_v33, 1  ;;  %v3705_v38 = vld [vmem:[#allocation5] sm:$0xff]  ;;  %vm4855_vm2 = vcmp.lt.s32.totalorder %v3694_v33, 127 }
  0x13   :  { %3320 = vrot.lane.b32.xlu2 %v3319_v12, %s3564_s0  ;;  %v3646_v17 = vld [vmem:[#allocation2 + $0x18] sm:$0xff]  ;;  %v3329_v20 = vpack.i.bf16 %v3644_v16, %v3642_v15  ;;  %v3658_v22 = vld [vmem:[#allocation2 + $0x60] sm:$0xff]  ;;  %v3344_v25 = vpack.i.bf16 %v3629_v10, %v3648_v18  ;;  %v3369_v31 = vpack.i.bf16 %v3623_v7, %v3644_v16 }
  0x14   :  { %v3650_v19 = vld [vmem:[#allocation2 + $0x38] sm:$0xff]  ;;  %v3354_v28 = vpack.i.bf16 %v3620_v6, %v3658_v22  ;;  %v3359_v30 = vpack.i.bf16 %v3631_v11, %v3646_v17 }
  0x15   :  { %v3324_v21 = vpack.i.bf16 %v3650_v19, %v3648_v18  ;;  %v3660_v23 = vld [vmem:[#allocation2 + $0x78] sm:$0xff]  ;;  %v3364_v29 = vpack.i.bf16 %v3609_v1, %v3650_v19 }
  0x16   :  { %v3334_v24 = vpack.i.bf16 %v3660_v23, %v3658_v22 }
  0x19   :  { %3315 = vrot.lane.b32.xlu1 %v3314_v13, %s3564_s0 }
  0x1a   :  { %3305 = vrot.lane.b32.xlu0 %v3304_v14, %s3564_s0 }
  0x1b   :  { %702 = vrot.lane.b32.xlu2 %v3646_v17, %s3564_s0 }
  0x21   :  { %3330 = vrot.lane.b32.xlu1 %v3329_v20, %s3564_s0 }
  0x22   :  { %3325 = vrot.lane.b32.xlu0 %v3324_v21, %s3564_s0 }
  0x23   :  { %3335 = vrot.lane.b32.xlu2 %v3334_v24, %s3564_s0 }
  0x29   :  { %3345 = vrot.lane.b32.xlu1 %v3344_v25, %s3565_s3 }
  0x2a   :  { %3340 = vrot.lane.b32.xlu0 %v3339_v26, %s3565_s3 }
  0x2b   :  { %3350 = vrot.lane.b32.xlu2 %v3349_v27, %s3565_s3 }
  0x31   :  { %780 = vrot.lane.b32.xlu1 %v3627_v9, %s3565_s3 }
  0x32   :  { %3355 = vrot.lane.b32.xlu0 %v3354_v28, %s3565_s3 }
  0x33   :  { %752 = vrot.lane.b32.xlu2 %v3615_v4, %s3565_s3 }
  0x39   :  { %3365 = vrot.lane.b32.xlu1 %v3364_v29, %s3565_s3 }
  0x3a   :  { %3360 = vrot.lane.b32.xlu0 %v3359_v30, %s3565_s3  ;;  %v4859_v30 = vmov 0  }
  0x3b   :  { %3370 = vrot.lane.b32.xlu2 %v3369_v31, %s3565_s3  ;;  %3374 = vset.pattern.permute.xlu1 %v4859_v30 }
  0x3c   :  { %3455 = vset.pattern.permute.xlu2 %v4859_v30  ;;  %3456 = vset.pattern.permute.xlu0 %v4859_v30 }
  0x42   :  { %778 = vrot.lane.b32.xlu0 %v3660_v23, %s3565_s3 }
  0x6d   :  { %v3696_v34 = vpop.permute.xlu2 %3320 }
  0x6e   :  { %v3323_v35 = vunpack.i.h.bf16 %v3696_v34  ;;  %v3322_v36 = vunpack.i.l.bf16 %v3696_v34 }
  0x70   :  { %v747_v37 = vsel %vm4861_vm0, %v3323_v35, %v3322_v36 }
  0x71   :  { %822 = vmatpush.msra.mxu0 %v747_v37  ;;  %v1491_v37 = vld [vmem:[#allocation5 + $0x10] sm:$0xff] }
  0x72   :  { %3171 = vmatmul.msk.f32.vlgmr.msra.gmra.mxu0 %vm4858_vm1, %v3705_v38 }
  0x75   :  { %v703_v43 = vpop.permute.xlu2 %702 }
  0x7d   :  { %v3336_v61 = vpop.permute.xlu2 %3335 }
  0x7e   :  { %v3337_v5 = vunpack.i.l.bf16 %v3336_v61  ;;  %v3338_v20 = vunpack.i.h.bf16 %v3336_v61 }
  0x80   :  { %v731_v29 = vsel %vm4861_vm0, %v3338_v20, %v3323_v35 }
  0x83   :  { %v3311_v39 = vpop.permute.xlu1 %3310 }
  0x84   :  { %v3301_v40 = vpop.permute.xlu0 %3300  ;;  %v3313_v47 = vunpack.i.h.bf16 %v3311_v39  ;;  %v3312_v48 = vunpack.i.l.bf16 %v3311_v39 }
  0x85   :  { %v3303_v41 = vunpack.i.h.bf16 %v3301_v40  ;;  %v3302_v42 = vunpack.i.l.bf16 %v3301_v40 }
  0x86   :  { %v737_v56 = vsel %vm4861_vm0, %v3312_v48, %v3313_v47 }
  0x87   :  { %v746_v44 = vsel %vm4861_vm0, %v3322_v36, %v3302_v42  ;;  %v745_v45 = vsel %vm4861_vm0, %v3302_v42, %v3303_v41  ;;  %v744_v46 = vsel %vm4861_vm0, %v3303_v41, %v703_v43 }
  0x88   :  { %842 = vmatpush.msra.mxu1 %v746_v44  ;;  %862 = vmatpush.msra.mxu2 %v745_v45 }
  0x89   :  { %882 = vmatpush.msra.mxu3 %v744_v46  ;;  %3173 = vmatmul.msk.f32.vlgmr.msra.gmra.mxu2 %vm4858_vm1, %v3705_v38 }
  0x8a   :  { %3172 = vmatmul.msk.f32.vlgmr.msra.gmra.mxu1 %vm4858_vm1, %v3705_v38  ;;  %3174 = vmatmul.msk.f32.vlgmr.msra.gmra.mxu3 %vm4858_vm1, %v3705_v38 }
  0x8b   :  { %v3316_v49 = vpop.permute.xlu1 %3315 }
  0x8c   :  { %v3318_v50 = vunpack.i.h.bf16 %v3316_v49  ;;  %v3317_v51 = vunpack.i.l.bf16 %v3316_v49  ;;  %v3306_v52 = vpop.permute.xlu0 %3305 }
  0x8d   :  { %v3308_v53 = vunpack.i.h.bf16 %v3306_v52  ;;  %v3307_v54 = vunpack.i.l.bf16 %v3306_v52 }
  0x8e   :  { %v733_v57 = vsel %vm4861_vm0, %v3317_v51, %v3318_v50  ;;  %v734_v26 = vsel %vm4861_vm0, %v3337_v5, %v3317_v51  ;;  %v732_v27 = vsel %vm4861_vm0, %v3318_v50, %v3338_v20 }
  0x8f   :  { %v741_v55 = vsel %vm4861_vm0, %v3307_v54, %v3308_v53 }
  0x90   :  { %942 = vmatpush.msrb.mxu2 %v741_v55 }
  0x91   :  { %3177 = vmatmul.msk.f32.vlgmr.msrb.gmra.mxu2 %vm4858_vm1, %v3705_v38 }
  0x92   :  { %1022 = vmatpush.msra.mxu2 %v737_v56 }
  0x93   :  { %v3331_v58 = vpop.permute.xlu1 %3330 }
  0x94   :  { %1102 = vmatpush.msrb.mxu2 %v733_v57  ;;  %v3332_v59 = vunpack.i.l.bf16 %v3331_v58  ;;  %v3326_v60 = vpop.permute.xlu0 %3325  ;;  %v3333_v62 = vunpack.i.h.bf16 %v3331_v58 }
  0x95   :  { %v3328_v63 = vunpack.i.h.bf16 %v3326_v60  ;;  %v3327_v3 = vunpack.i.l.bf16 %v3326_v60 }
  0x96   :  { %v738_v21 = vsel %vm4861_vm0, %v3332_v59, %v3312_v48  ;;  %v736_v24 = vsel %vm4861_vm0, %v3313_v47, %v3333_v62  ;;  %v735_v28 = vsel %vm4861_vm0, %v3333_v62, %v3337_v5 }
  0x97   :  { %v743_v12 = vsel %vm4861_vm0, %v703_v43, %v3327_v3  ;;  %v742_v13 = vsel %vm4861_vm0, %v3327_v3, %v3307_v54  ;;  %v740_v14 = vsel %vm4861_vm0, %v3308_v53, %v3328_v63  ;;  %v739_v25 = vsel %vm4861_vm0, %v3328_v63, %v3332_v59 }
  0x98   :  { %902 = vmatpush.msrb.mxu0 %v743_v12  ;;  %922 = vmatpush.msrb.mxu1 %v742_v13 }
  0x99   :  { %962 = vmatpush.msrb.mxu3 %v740_v14  ;;  %3175 = vmatmul.msk.f32.vlgmr.msrb.gmra.mxu0 %vm4858_vm1, %v3705_v38 }
  0x9a   :  { %3176 = vmatmul.msk.f32.vlgmr.msrb.gmra.mxu1 %vm4858_vm1, %v3705_v38  ;;  %3178 = vmatmul.msk.f32.vlgmr.msrb.gmra.mxu3 %vm4858_vm1, %v3705_v38 }
  0x9b   :  { %1002 = vmatpush.msra.mxu1 %v738_v21  ;;  %3181 = vmatmul.msk.f32.vlgmr.msra.gmra.mxu2 %vm4858_vm1, %v3705_v38  ;;  %v3929_v21 = vadd.s32 128, %v3694_v33 }
  0x9c   :  { %1042 = vmatpush.msra.mxu3 %v736_v24  ;;  %982 = vmatpush.msra.mxu0 %v739_v25  ;;  %v3932_v24 = vadd.s32 256, %v3694_v33 }
  0x9d   :  { %1082 = vmatpush.msrb.mxu1 %v734_v26  ;;  %1185 = vmatpush.msra.mxu2 %v3611_v2  ;;  %v3771_v2 = vld [vmem:[#allocation5 + $0x8] sm:$0xff]  ;;  %v133_v25 = vand.u32 65535, %v3929_v21  ;;  %v3936_v26 = vadd.s32 384, %v3694_v33 }
  0x9e   :  { %1122 = vmatpush.msrb.mxu3 %v732_v27  ;;  %1062 = vmatpush.msrb.mxu0 %v735_v28  ;;  %v3941_v28 = vadd.s32 512, %v3694_v33 }
  0xa1   :  { %3179 = vmatmul.msk.f32.vlgmr.msra.gmra.mxu0 %vm4858_vm1, %v3705_v38 }
  0xa2   :  { %3180 = vmatmul.msk.f32.vlgmr.msra.gmra.mxu1 %vm4858_vm1, %v3705_v38  ;;  %3182 = vmatmul.msk.f32.vlgmr.msra.gmra.mxu3 %vm4858_vm1, %v3705_v38 }
  0xa3   :  { %3185 = vmatmul.msk.f32.vlgmr.msrb.gmra.mxu2 %vm4858_vm1, %v3705_v38  ;;  %1142 = vmatpush.msra.mxu0 %v731_v29 }
  0xa4   :  { %1165 = vmatpush.msra.mxu1 %v3625_v8  ;;  %1205 = vmatpush.msra.mxu3 %v3615_v4  ;;  %v3785_v4 = vpop.permute.xlu0 %3340  ;;  %v3795_v8 = vpop.permute.xlu2 %3350 }
  0xa5   :  { %1265 = vmatpush.msrb.mxu2 %v3629_v10  ;;  %v3343_v10 = vunpack.i.h.bf16 %v3785_v4  ;;  %v3353_v34 = vunpack.i.h.bf16 %v3795_v8  ;;  %v3352_v35 = vunpack.i.l.bf16 %v3795_v8  ;;  %v137_v8 = vmul.u32 61680, %v133_v25 }
  0xa9   :  { %3183 = vmatmul.msk.f32.vlgmr.msrb.gmra.mxu0 %vm4858_vm1, %v3705_v38 }
  0xaa   :  { %3184 = vmatmul.msk.f32.vlgmr.msrb.gmra.mxu1 %vm4858_vm1, %v3705_v38  ;;  %3186 = vmatmul.msk.f32.vlgmr.msrb.gmra.mxu3 %vm4858_vm1, %v3705_v38 }
  0xab   :  { %3189 = vmatmul.msk.f32.vlgmr.msra.gmra.mxu2 %vm4858_vm1, %v3771_v2  ;;  %1225 = vmatpush.msrb.mxu0 %v3646_v17 }
  0xac   :  { %1245 = vmatpush.msrb.mxu1 %v3648_v18  ;;  %1285 = vmatpush.msrb.mxu3 %v3631_v11  ;;  %v3342_v11 = vunpack.i.l.bf16 %v3785_v4  ;;  %v3804_v17 = vpop.permute.xlu0 %3355  ;;  %v134_v4 = vshrl.u32 %v3929_v21, 16 }
  0xad   :  { %1345 = vmatpush.msra.mxu2 %v3607_v0  ;;  %v3346_v0 = vpop.permute.xlu1 %3345  ;;  %v3358_v42 = vunpack.i.h.bf16 %v3804_v17  ;;  %v3357_v43 = vunpack.i.l.bf16 %v3804_v17  ;;  %v136_v17 = vmul.u32 61681, %v133_v25 }
  0xae   :  { %v3347_v18 = vunpack.i.l.bf16 %v3346_v0 }
  0xaf   :  { %v786_v47 = vsel %vm4855_vm2, %v3357_v43, %v3358_v42 }
  0xb1   :  { %3187 = vmatmul.msk.f32.vlgmr.msra.gmra.mxu0 %vm4858_vm1, %v3705_v38 }
  0xb2   :  { %3188 = vmatmul.msk.f32.vlgmr.msra.gmra.mxu1 %vm4858_vm1, %v3771_v2  ;;  %3190 = vmatmul.msk.f32.vlgmr.msra.gmra.mxu3 %vm4858_vm1, %v3771_v2 }
  0xb3   :  { %3193 = vmatmul.msk.f32.vlgmr.msrb.gmra.mxu2 %vm4858_vm1, %v3771_v2  ;;  %1305 = vmatpush.msra.mxu0 %v3650_v19  ;;  %v753_v19 = vpop.permute.xlu2 %752 }
  0xb4   :  { %1325 = vmatpush.msra.mxu1 %v3642_v15  ;;  %1365 = vmatpush.msra.mxu3 %v3609_v1  ;;  %v798_v1 = vsel %vm4855_vm2, %v3342_v11, %v3343_v10  ;;  %v3348_v15 = vunpack.i.h.bf16 %v3346_v0  ;;  %v162_v0 = vand.u32 65535, %v3932_v24 }
  0xb5   :  { %1425 = vmatpush.msrb.mxu2 %v3620_v6  ;;  %v1852_v6 = vld [vmem:[%s4840_s2] sm:$0xff]  ;;  %v3826_v31 = vpop.permute.xlu1 %780 }
  0xb6   :  { %1855 = vperm.xlu1 %3374, %v1852_v6   ;;  %v799_v54 = vsel %vm4855_vm2, %v3826_v31, %v3342_v11  ;;  %v191_v11 = vand.u32 65535, %v3936_v26  ;;  %v140_v6 = vshll.u32 %v137_v8, 16 }
  0xb8   :  { %vm144_vm3 = vc.u32 %v136_v17, %v140_v6 }
  0xb9   :  { %3191 = vmatmul.msk.f32.vlgmr.msrb.gmra.mxu0 %vm4858_vm1, %v3771_v2 }
  0xba   :  { %3192 = vmatmul.msk.f32.vlgmr.msrb.gmra.mxu1 %vm4858_vm1, %v3771_v2  ;;  %3194 = vmatmul.msk.f32.vlgmr.msrb.gmra.mxu3 %vm4858_vm1, %v3771_v2 }
  0xbb   :  { %3197 = vmatmul.msk.f32.vlgmr.msra.gmra.mxu2 %vm4858_vm1, %v3771_v2  ;;  %1445 = vmatpush.msrb.mxu3 %v3623_v7  ;;  %v797_v7 = vsel %vm4855_vm2, %v3343_v10, %v753_v19  ;;  %v3371_v49 = vpop.permute.xlu2 %3370 }
  0xbc   :  { %1385 = vmatpush.msrb.mxu0 %v3644_v16  ;;  %1405 = vmatpush.msrb.mxu1 %v3658_v22  ;;  %v3361_v16 = vpop.permute.xlu0 %3360  ;;  %v794_v22 = vsel %vm4855_vm2, %v3347_v18, %v3348_v15  ;;  %v3372_v50 = vunpack.i.l.bf16 %v3371_v49  ;;  %v3373_v51 = vunpack.i.h.bf16 %v3371_v49 }
  0xbd   :  { %1510 = vmatpush.msra.mxu2 %v798_v1  ;;  %v3362_v32 = vunpack.i.l.bf16 %v3361_v16  ;;  %v3363_v36 = vunpack.i.h.bf16 %v3361_v16  ;;  %v3366_v39 = vpop.permute.xlu1 %3365  ;;  %v138_v1 = vmul.u32 61681, %v134_v4 }
  0xbe   :  { %v3367_v41 = vunpack.i.l.bf16 %v3366_v39  ;;  %v3368_v44 = vunpack.i.h.bf16 %v3366_v39  ;;  %v787_v52 = vsel %vm4855_vm2, %v3372_v50, %v3357_v43  ;;  %v785_v55 = vsel %vm4855_vm2, %v3358_v42, %v3373_v51 }
  0xbf   :  { %v795_v38 = vsel %vm4855_vm2, %v3362_v32, %v3347_v18  ;;  %v793_v40 = vsel %vm4855_vm2, %v3348_v15, %v3363_v36  ;;  %v163_v15 = vshrl.u32 %v3932_v24, 16  ;;  %v166_v18 = vmul.u32 61680, %v162_v0 }
  0xc0   :  { %v791_v45 = vsel %vm4855_vm2, %v3367_v41, %v3352_v35  ;;  %v789_v46 = vsel %vm4855_vm2, %v3353_v34, %v3368_v44  ;;  %v792_v48 = vsel %vm4855_vm2, %v3363_v36, %v3367_v41  ;;  %v788_v53 = vsel %vm4855_vm2, %v3368_v44, %v3372_v50 }
  0xc1   :  { %3195 = vmatmul.msk.f32.vlgmr.msra.gmra.mxu0 %vm4858_vm1, %v3771_v2  ;;  %v142_v16 = vshll.u32 %v138_v1, 16  ;;  %v169_v36 = vshll.u32 %v166_v18, 16  ;;  %v195_v39 = vmul.u32 61680, %v191_v11  ;;  %v141_v44 = vshrl.u32 %v137_v8, 16 }
  0xc2   :  { %3196 = vmatmul.msk.f32.vlgmr.msra.gmra.mxu1 %vm4858_vm1, %v3771_v2  ;;  %3198 = vmatmul.msk.f32.vlgmr.msra.gmra.mxu3 %vm4858_vm1, %v3771_v2  ;;  %v194_v50 = vmul.u32 61681, %v191_v11 }
  0xc3   :  { %3201 = vmatmul.msk.f32.vlgmr.msrb.gmra.mxu2 %vm4858_vm1, %v3771_v2  ;;  %1530 = vmatpush.msra.mxu3 %v797_v7  ;;  %v139_v7 = vmul.u32 61680, %v134_v4 }
  0xc4   :  { %1485 = vmatpush.msra.mxu1 %v3627_v9  ;;  %1590 = vmatpush.msrb.mxu2 %v794_v22  ;;  %v790_v9 = vsel %vm4855_vm2, %v3352_v35, %v3353_v34  ;;  %v779_v56 = vpop.permute.xlu0 %778  ;;  %v146_v22 = vadd.s32 %v140_v6, %v136_v17  ;;  %v165_v34 = vmul.u32 61681, %v162_v0  ;;  %v167_v35 = vmul.u32 61681, %v163_v15 }
  0xc5   :  { %1465 = vmatpush.msra.mxu0 %v3660_v23  ;;  %v796_v23 = vsel %vm4855_vm2, %v753_v19, %v3362_v32  ;;  %v784_v57 = vsel %vm4855_vm2, %v3373_v51, %v779_v56  ;;  %v783_v58 = vsel %vm4855_vm2, %v779_v56, %v3826_v31  ;;  %v192_v19 = vshrl.u32 %v3936_v26, 16 }
  0xc6   :  { %v220_v31 = vand.u32 65535, %v3941_v28  ;;  %v145_v32 = vsel %vm144_vm3, 1, %v4859_v30  ;;  %vm148_vm4 = vc.u32 %v146_v22, %v142_v16  ;;  %vm173_vm5 = vc.u32 %v165_v34, %v169_v36 }
  0xc7   :  { %v175_v41 = vadd.s32 %v169_v36, %v165_v34  ;;  %v221_v51 = vshrl.u32 %v3941_v28, 16  ;;  %v172_v8 = vshrl.u32 %v167_v35, 16 }
  0xc8   :  { %v223_v6 = vmul.u32 61681, %v220_v31 }
  0xc9   :  { %3199 = vmatmul.msk.f32.vlgmr.msrb.gmra.mxu0 %vm4858_vm1, %v3771_v2 }
  0xca   :  { %3200 = vmatmul.msk.f32.vlgmr.msrb.gmra.mxu1 %vm4858_vm1, %v3771_v2  ;;  %3202 = vmatmul.msk.f32.vlgmr.msrb.gmra.mxu3 %vm4858_vm1, %v3771_v2 }
  0xcb   :  { %3205 = vmatmul.msk.f32.vlgmr.msra.gmra.mxu2 %vm4858_vm1, %v1491_v37  ;;  %1570 = vmatpush.msrb.mxu1 %v795_v38  ;;  %v168_v38 = vmul.u32 61680, %v163_v15  ;;  %v225_v15 = vmul.u32 61681, %v221_v51 }
  0xcc   :  { %1610 = vmatpush.msrb.mxu3 %v793_v40  ;;  %1670 = vmatpush.msra.mxu2 %v790_v9  ;;  %v149_v9 = vsel %vm148_vm4, 1, %v4859_v30 }
  0xcd   :  { %1550 = vmatpush.msrb.mxu0 %v796_v23  ;;  %v171_v23 = vshll.u32 %v167_v35, 16 }
  0xcf   :  { %vm177_vm6 = vc.u32 %v175_v41, %v171_v23  ;;  %v229_v23 = vshll.u32 %v225_v15, 16 }
  0xd0   :  { %v178_v56 = vsel %vm177_vm6, 1, %v4859_v30 }
  0xd1   :  { %3203 = vmatmul.msk.f32.vlgmr.msra.gmra.mxu0 %vm4858_vm1, %v3771_v2 }
  0xd2   :  { %3204 = vmatmul.msk.f32.vlgmr.msra.gmra.mxu1 %vm4858_vm1, %v3771_v2  ;;  %3206 = vmatmul.msk.f32.vlgmr.msra.gmra.mxu3 %vm4858_vm1, %v1491_v37 }
  0xd3   :  { %3209 = vmatmul.msk.f32.vlgmr.msrb.gmra.mxu2 %vm4858_vm1, %v1491_v37  ;;  %1650 = vmatpush.msra.mxu1 %v791_v45 }
  0xd4   :  { %1690 = vmatpush.msra.mxu3 %v789_v46  ;;  %1750 = vmatpush.msrb.mxu2 %v786_v47  ;;  %v174_v46 = vsel %vm173_vm5, 1, %v4859_v30  ;;  %v196_v47 = vmul.u32 61681, %v192_v19 }
  0xd5   :  { %1630 = vmatpush.msra.mxu0 %v792_v48  ;;  %v176_v49 = vadd.s32 %v174_v46, %v168_v38 }
  0xd6   :  { %v200_v25 = vshll.u32 %v196_v47, 16  ;;  %v201_v38 = vshrl.u32 %v196_v47, 16 }
  0xd7   :  { %v180_v0 = vadd.s32 %v178_v56, %v176_v49  ;;  %v3974_v49 = vadd.s32 896, %v3694_v33 }
  0xd9   :  { %3207 = vmatmul.msk.f32.vlgmr.msrb.gmra.mxu0 %vm4858_vm1, %v1491_v37  ;;  %v307_v56 = vand.u32 65535, %v3974_v49 }
  0xda   :  { %3208 = vmatmul.msk.f32.vlgmr.msrb.gmra.mxu1 %vm4858_vm1, %v1491_v37  ;;  %3210 = vmatmul.msk.f32.vlgmr.msrb.gmra.mxu3 %vm4858_vm1, %v1491_v37 }
  0xdb   :  { %3213 = vmatmul.msk.f32.vlgmr.msra.gmra.mxu2 %vm4858_vm1, %v1491_v37  ;;  %1730 = vmatpush.msrb.mxu1 %v787_v52  ;;  %v143_v52 = vshrl.u32 %v138_v1, 16 }
  0xdc   :  { %1770 = vmatpush.msrb.mxu3 %v785_v55  ;;  %1830 = vmatpush.msra.mxu2 %v799_v54  ;;  %v170_v54 = vshrl.u32 %v166_v18, 16  ;;  %v224_v55 = vmul.u32 61680, %v220_v31  ;;  %v199_v18 = vshrl.u32 %v195_v39, 16  ;;  %v226_v31 = vmul.u32 61680, %v221_v51 }
  0xdd   :  { %1710 = vmatpush.msrb.mxu0 %v788_v53 }
  0xde   :  { %v181_v11 = vadd.s32 %v180_v0, %v170_v54  ;;  %v227_v1 = vshll.u32 %v224_v55, 16  ;;  %v308_v0 = vshrl.u32 %v3974_v49, 16 }
  0xe0   :  { %v182_v36 = vadd.s32 %v181_v11, %v172_v8  ;;  %vm231_vm9 = vc.u32 %v223_v6, %v227_v1 }
  0xe1   :  { %3211 = vmatmul.msk.f32.vlgmr.msra.gmra.mxu0 %vm4858_vm1, %v1491_v37  ;;  %v232_v46 = vsel %vm231_vm9, 1, %v4859_v30 }
  0xe2   :  { %3212 = vmatmul.msk.f32.vlgmr.msra.gmra.mxu1 %vm4858_vm1, %v1491_v37  ;;  %3214 = vmatmul.msk.f32.vlgmr.msra.gmra.mxu3 %vm4858_vm1, %v1491_v37  ;;  %v234_v54 = vadd.s32 %v232_v46, %v226_v31 }
  0xe3   :  { %3217 = vmatmul.msk.f32.vlgmr.msrb.gmra.mxu2 %vm4858_vm1, %v1491_v37  ;;  %1810 = vmatpush.msra.mxu1 %v783_v58  ;;  %v198_v58 = vshll.u32 %v195_v39, 16  ;;  %v233_v39 = vadd.s32 %v227_v1, %v223_v6  ;;  %v310_v1 = vmul.u32 61681, %v307_v56 }
  0xe4   :  { %1790 = vmatpush.msra.mxu0 %v784_v57  ;;  %v197_v57 = vmul.u32 61680, %v192_v19 }
  0xe5   :  { %vm202_vm7 = vc.u32 %v194_v50, %v198_v58  ;;  %v204_v17 = vadd.s32 %v198_v58, %v194_v50  ;;  %vm235_vm10 = vc.u32 %v233_v39, %v229_v23 }
  0xe6   :  { %v203_v16 = vsel %vm202_vm7, 1, %v4859_v30  ;;  %v236_v51 = vsel %vm235_vm10, 1, %v4859_v30 }
  0xe7   :  { %vm206_vm8 = vc.u32 %v204_v17, %v200_v25  ;;  %v238_v8 = vadd.s32 %v236_v51, %v234_v54 }
  0xe8   :  { %v207_v35 = vsel %vm206_vm8, 1, %v4859_v30 }
  0xe9   :  { %3215 = vmatmul.msk.f32.vlgmr.msrb.gmra.mxu0 %vm4858_vm1, %v1491_v37 }
  0xea   :  { %3216 = vmatmul.msk.f32.vlgmr.msrb.gmra.mxu1 %vm4858_vm1, %v1491_v37  ;;  %3218 = vmatmul.msk.f32.vlgmr.msrb.gmra.mxu3 %vm4858_vm1, %v1491_v37 }
  0xeb   :  { %3221 = vmatmul.msk.f32.vlgmr.msra.gmra.mxu2 %vm4858_vm1, %v1491_v37 }
  0xef   :  { %v3908_v60 = vpop.f32.mrf.mxu0 }
  0xf1   :  { %3219 = vmatmul.msk.f32.vlgmr.msra.gmra.mxu0 %vm4858_vm1, %v1491_v37 }
  0xf2   :  { %3220 = vmatmul.msk.f32.vlgmr.msra.gmra.mxu1 %vm4858_vm1, %v1491_v37  ;;  %v147_v37 = vadd.s32 %v145_v32, %v139_v7  ;;  %v205_v32 = vadd.s32 %v203_v16, %v197_v57  ;;  %v104_v57 = vand.u32 65535, %v3694_v33 }
  0xf4   :  { %v151_v45 = vadd.s32 %v149_v9, %v147_v37  ;;  %v209_v9 = vadd.s32 %v207_v35, %v205_v32  ;;  %v313_v32 = vmul.u32 61680, %v308_v0 }
  0xf6   :  { %v152_v53 = vadd.s32 %v151_v45, %v141_v44  ;;  %v183_v44 = vshrl.u32 %v182_v36, 4  ;;  %v210_v45 = vadd.s32 %v209_v9, %v199_v18  ;;  %v312_v18 = vmul.u32 61681, %v308_v0 }
  0xf8   :  { %v153_v4 = vadd.s32 %v152_v53, %v143_v52  ;;  %v184_v50 = vmul.u32 17, %v183_v44  ;;  %v211_v52 = vadd.s32 %v210_v45, %v201_v38  ;;  %v228_v53 = vshrl.u32 %v224_v55, 16 }
  0xf9   :  { %v316_v38 = vshll.u32 %v312_v18, 16 }
  0xfa   :  { %v154_v7 = vshrl.u32 %v153_v4, 4  ;;  %v212_v25 = vshrl.u32 %v211_v52, 4  ;;  %v230_v4 = vshrl.u32 %v225_v15, 16  ;;  %v3998_v11 = vsub.s32 %v3932_v24, %v184_v50 }
  0xfb   :  { %v317_v50 = vshrl.u32 %v312_v18, 16 }
  0xfc   :  { %v155_v41 = vmul.u32 17, %v154_v7  ;;  %vm596_vm13 = vcmp.ne.s32.totalorder %v3998_v11, 0  ;;  %vm613_vm14 = vcmp.lt.s32.totalorder %v3998_v11, 0  ;;  %v4022_v36 = vadd.s32 17, %v3998_v11 }
  0xfd   :  { %vm4049_vm7 = vmand %vm613_vm14, %vm596_vm13 }
  0xfe   :  { %v3977_v47 = vsub.s32 %v3929_v21, %v155_v41 }
 0x100   :  { %vm595_vm11 = vcmp.ne.s32.totalorder %v3977_v47, 0  ;;  %vm612_vm12 = vcmp.lt.s32.totalorder %v3977_v47, 0 }
 0x101   :  { %vm4034_vm4 = vmand %vm612_vm12, %vm595_vm11 }
 0x107   :  { %v3910_v61 = vpop.f32.mrf.mxu1 }
 0x10c   :  { %v3906_v59 = vpop.f32.mrf.mxu2 }
 0x10d   :  { %v3912_v62 = vpop.f32.mrf.mxu3 }
 0x114   :  { %v3914_v63 = vpop.f32.mrf.mxu2 }
 0x116   :  { %v3916_v3 = vpop.f32.mrf.mxu0 }
 0x117   :  { %v3918_v5 = vpop.f32.mrf.mxu1 }
 0x11d   :  { %v3920_v12 = vpop.f32.mrf.mxu3 }
 0x11e   :  { %v3922_v13 = vpop.f32.mrf.mxu2  ;;  %v3924_v14 = vpop.f32.mrf.mxu0 }
 0x11f   :  { %v3926_v20 = vpop.f32.mrf.mxu1 }
 0x125   :  { %v3938_v27 = vpop.f32.mrf.mxu3 }
 0x126   :  { %v3943_v29 = vpop.f32.mrf.mxu2  ;;  %v3945_v2 = vpop.f32.mrf.mxu0 }
 0x127   :  { %v3949_v10 = vpop.f32.mrf.mxu1 }
 0x12d   :  { %v3956_v40 = vpop.f32.mrf.mxu3 }
 0x12e   :  { %v3959_v42 = vpop.f32.mrf.mxu2  ;;  %v3961_v43 = vpop.f32.mrf.mxu0 }
 0x12f   :  { %v3964_v48 = vpop.f32.mrf.mxu1  ;;  %v3985_v55 = vadd.f32 %v3959_v42, %v3910_v61  ;;  %v239_v42 = vadd.s32 %v238_v8, %v228_v53 }
 0x135   :  { %v1207_v22 = vpop.f32.mrf.mxu3 }
 0x136   :  { %v3969_v34 = vpop.f32.mrf.mxu2  ;;  %v1227_v19 = vpop.f32.mrf.mxu0  ;;  %v3988_v17 = vadd.f32 %v1207_v22, %v3906_v59  ;;  %v213_v59 = vmul.u32 17, %v212_v25  ;;  %v311_v22 = vmul.u32 61680, %v307_v56 }
 0x137   :  { %v1247_v37 = vpop.f32.mrf.mxu1  ;;  %v4001_v15 = vadd.f32 %v1227_v19, %v3912_v62  ;;  %v240_v62 = vadd.s32 %v239_v42, %v230_v4 }
 0x138   :  { %v4004_v16 = vadd.f32 %v1247_v37, %v3916_v3  ;;  %v4014_v24 = vsub.s32 %v3936_v26, %v213_v59  ;;  %v4018_v3 = vadd.s32 17, %v3977_v47  ;;  %v314_v19 = vshll.u32 %v311_v22, 16 }
 0x139   :  { %v241_v35 = vshrl.u32 %v240_v62, 4  ;;  %v315_v37 = vshrl.u32 %v311_v22, 16 }
 0x13a   :  { %vm318_vm15 = vc.u32 %v310_v1, %v314_v19  ;;  %v320_v26 = vadd.s32 %v314_v19, %v310_v1  ;;  %vm597_vm3 = vcmp.ne.s32.totalorder %v4014_v24, 0  ;;  %vm614_vm5 = vcmp.lt.s32.totalorder %v4014_v24, 0 }
 0x13b   :  { %v242_v23 = vmul.u32 17, %v241_v35  ;;  %v319_v41 = vsel %vm318_vm15, 1, %v4859_v30  ;;  %v663_v0 = vsel %vm4034_vm4, %v4018_v3, %v3977_v47  ;;  %vm4070_vm10 = vmand %vm614_vm5, %vm597_vm3  ;;  %v648_v47 = vadd.s32 17, %v4014_v24 }
 0x13c   :  { %v321_v52 = vadd.s32 %v319_v41, %v313_v32  ;;  %vm322_vm6 = vc.u32 %v320_v26, %v316_v38  ;;  %v4076_v3 = vadd.s32 1152, %v3694_v33  ;;  %v4084_v38 = vadd.s32 1280, %v3694_v33 }
 0x13d   :  { %v1287_v58 = vpop.f32.mrf.mxu3  ;;  %v323_v25 = vsel %vm322_vm6, 1, %v4859_v30  ;;  %vm4116_vm14 = vcmp.ne.s32.totalorder %v663_v0, 0 }
 0x13e   :  { %v3991_v21 = vadd.f32 %v1287_v58, %v3914_v63  ;;  %v3993_v6 = vpop.f32.mrf.mxu2  ;;  %v3995_v7 = vpop.f32.mrf.mxu0  ;;  %v4010_v63 = vadd.s32 1024, %v3694_v33  ;;  %v243_v58 = vsub.s32 %v3941_v28, %v242_v23  ;;  %v664_v28 = vsel %vm4049_vm7, %v4022_v36, %v3998_v11 }
 0x13f   :  { %v4006_v61 = vpop.f32.mrf.mxu1  ;;  %v365_v26 = vand.u32 65535, %v4076_v3  ;;  %vm4120_vm15 = vcmp.ne.s32.totalorder %v664_v28, 0  ;;  %v395_v22 = vshrl.u32 %v4084_v38, 16 }
 0x140   :  { %v336_v9 = vand.u32 65535, %v4010_v63  ;;  %v337_v44 = vshrl.u32 %v4010_v63, 16  ;;  %vm598_vm8 = vcmp.ne.s32.totalorder %v243_v58, 0  ;;  %vm615_vm9 = vcmp.lt.s32.totalorder %v243_v58, 0 }
 0x141   :  { %v649_v62 = vadd.s32 17, %v243_v58  ;;  %vm4078_vm11 = vmand %vm615_vm9, %vm598_vm8 }
 0x142   :  { %v339_v8 = vmul.u32 61681, %v336_v9  ;;  %v341_v59 = vmul.u32 61681, %v337_v44  ;;  %v342_v1 = vmul.u32 61680, %v337_v44 }
 0x144   :  { %v345_v18 = vshll.u32 %v341_v59, 16 }
 0x145   :  { %v4025_v31 = vpop.f32.mrf.mxu3 }
 0x146   :  { %v1427_v45 = vpop.f32.mrf.mxu2  ;;  %v1387_v46 = vpop.f32.mrf.mxu0 }
 0x147   :  { %v4040_v53 = vadd.f32 %v1427_v45, %v3949_v10  ;;  %v4043_v54 = vadd.f32 %v1387_v46, %v3938_v27  ;;  %v1407_v51 = vpop.f32.mrf.mxu1  ;;  %v325_v10 = vadd.s32 %v323_v25, %v321_v52  ;;  %v340_v27 = vmul.u32 61680, %v336_v9 }
 0x148   :  { %v4056_v4 = vadd.f32 %v1407_v51, %v3945_v2  ;;  %v366_v9 = vshrl.u32 %v4076_v3, 16  ;;  %v665_v52 = vsel %vm4070_vm10, %v648_v47, %v4014_v24  ;;  %v666_v51 = vsel %vm4078_vm11, %v649_v62, %v243_v58 }
 0x149   :  { %v326_v42 = vadd.s32 %v325_v10, %v315_v37  ;;  %v343_v2 = vshll.u32 %v340_v27, 16  ;;  %v344_v19 = vshrl.u32 %v340_v27, 16  ;;  %v346_v25 = vshrl.u32 %v341_v59, 16 }
 0x14a   :  { %v4112_v27 = vadd.f32 %v4006_v61, %v3924_v14  ;;  %v4114_v24 = vmul.u32 61681, %v366_v9  ;;  %v394_v14 = vand.u32 65535, %v4084_v38  ;;  %vm4129_vm3 = vcmp.ne.s32.totalorder %v665_v52, 0 }
 0x14b   :  { %v327_v32 = vadd.s32 %v326_v42, %v317_v50  ;;  %vm347_vm12 = vc.u32 %v339_v8, %v343_v2  ;;  %v349_v36 = vadd.s32 %v343_v2, %v339_v8  ;;  %v4104_v8 = vmul.u32 61680, %v365_v26 }
 0x14c   :  { %v348_v37 = vsel %vm347_vm12, 1, %v4859_v30  ;;  %v368_v42 = vmul.u32 61681, %v365_v26  ;;  %vm4133_vm4 = vcmp.ne.s32.totalorder %v666_v51, 0  ;;  %v371_v28 = vmul.u32 61680, %v366_v9 }
 0x14d   :  { %v1447_v35 = vpop.f32.mrf.mxu3  ;;  %v328_v45 = vshrl.u32 %v327_v32, 4  ;;  %v350_v46 = vadd.s32 %v348_v37, %v342_v1  ;;  %vm351_vm13 = vc.u32 %v349_v36, %v345_v18  ;;  %v373_v2 = vshrl.u32 %v4104_v8, 16 }
 0x14e   :  { %v4089_v23 = vadd.f32 %v1447_v35, %v3943_v29  ;;  %v4091_v41 = vpop.f32.mrf.mxu2  ;;  %v1467_v44 = vpop.f32.mrf.mxu0  ;;  %v352_v29 = vsel %vm351_vm13, 1, %v4859_v30  ;;  %v374_v47 = vshll.u32 %v4114_v24, 16  ;;  %v375_v62 = vshrl.u32 %v4114_v24, 16 }
 0x14f   :  { %v4094_v39 = vadd.f32 %v1467_v44, %v3956_v40  ;;  %v4096_v50 = vpop.f32.mrf.mxu1  ;;  %v329_v56 = vmul.u32 17, %v328_v45  ;;  %v354_v10 = vadd.s32 %v352_v29, %v350_v46  ;;  %v4108_v40 = vadd.f32 %v3995_v7, %v3920_v12  ;;  %v4149_v44 = vpop.permute.xlu1 %1855 }
 0x150   :  { %v372_v7 = vshll.u32 %v4104_v8, 16  ;;  %v4141_v18 = vmul.u32 61681, %v394_v14  ;;  %v4147_v9 = vmul.u32 61680, %v394_v14 }
 0x151   :  { %v4125_v1 = vsub.s32 %v3974_v49, %v329_v56  ;;  %v355_v12 = vadd.s32 %v354_v10, %v344_v19 }
 0x152   :  { %vm376_vm7 = vc.u32 %v368_v42, %v372_v7  ;;  %v378_v32 = vadd.s32 %v372_v7, %v368_v42  ;;  %v4173_v42 = vmul.u32 61681, %v395_v22 }
 0x153   :  { %v356_v49 = vadd.s32 %v355_v12, %v346_v25  ;;  %vm601_vm5 = vcmp.ne.s32.totalorder %v4125_v1, 0  ;;  %vm618_vm6 = vcmp.lt.s32.totalorder %v4125_v1, 0  ;;  %v377_v26 = vsel %vm376_vm7, 1, %v4859_v30 }
 0x154   :  { %v652_v51 = vadd.s32 17, %v4125_v1  ;;  %v379_v29 = vadd.s32 %v377_v26, %v371_v28  ;;  %vm4162_vm8 = vmand %vm618_vm6, %vm601_vm5  ;;  %vm380_vm9 = vc.u32 %v378_v32, %v374_v47  ;;  %v400_v47 = vmul.u32 61680, %v395_v22 }
 0x155   :  { %v1532_v11 = vpop.f32.mrf.mxu3  ;;  %v357_v37 = vshrl.u32 %v356_v49, 4  ;;  %v381_v8 = vsel %vm380_vm9, 1, %v4859_v30  ;;  %v401_v32 = vshll.u32 %v4147_v9, 16 }
 0x156   :  { %v1836_v19 = vadd.f32 %v1532_v11, %v3985_v55  ;;  %v1592_v36 = vpop.f32.mrf.mxu2  ;;  %v1552_v35 = vpop.f32.mrf.mxu0  ;;  %v383_v7 = vadd.s32 %v381_v8, %v379_v29  ;;  %v669_v49 = vsel %vm4162_vm8, %v652_v51, %v4125_v1  ;;  %v403_v51 = vshll.u32 %v4173_v42, 16 }
 0x157   :  { %v1839_v45 = vadd.f32 %v1592_v36, %v4004_v16  ;;  %v1837_v46 = vadd.f32 %v1552_v35, %v3988_v17  ;;  %v1572_v52 = vpop.f32.mrf.mxu1  ;;  %v358_v25 = vmul.u32 17, %v357_v37  ;;  %v1168_v8 = vadd.f32 %v3964_v48, %v3908_v60 }
 0x158   :  { %v4155_v56 = vadd.f32 %v4149_v44, %v1836_v19  ;;  %v1838_v55 = vadd.f32 %v1572_v52, %v4001_v15  ;;  %v384_v35 = vadd.s32 %v383_v7, %v373_v2  ;;  %v1268_v7 = vadd.f32 %v3969_v34, %v3918_v5 }
 0x159   :  { %v4167_v17 = vadd.f32 %v4149_v44, %v1839_v45  ;;  %v4170_v16 = vadd.f32 %v4149_v44, %v1837_v46  ;;  %v359_v12 = vsub.s32 %v4010_v63, %v358_v25  ;;  %vm4234_vm13 = vcmp.ne.s32.totalorder %v669_v49, 0 }
 0x15a   :  { %v4851_v15 = vmax.f32 %v4155_v56, 0.0  ;;  %v4177_v24 = vadd.f32 %v4149_v44, %v1838_v55  ;;  %vm405_vm5 = vc.u32 %v4141_v18, %v401_v32  ;;  %v407_v60 = vadd.s32 %v401_v32, %v4141_v18 }
 0x15b   :  { %v4844_v14 = vmax.f32 %v4167_v17, 0.0  ;;  %v4849_v28 = vmax.f32 %v4170_v16, 0.0  ;;  %vm602_vm10 = vcmp.ne.s32.totalorder %v359_v12, 0  ;;  %vm619_vm11 = vcmp.lt.s32.totalorder %v359_v12, 0 }
 0x15c   :  { %v4850_v11 = vmax.f32 %v4177_v24, 0.0  ;;  %v4191_v63 = vsel %vm4116_vm14, %v4851_v15, 0.0  ;;  %vm4199_vm12 = vmand %vm619_vm11, %vm602_vm10  ;;  %v653_v22 = vadd.s32 17, %v359_v12  ;;  %v4896_v48 = vmov 0 }
 0x15d   :  { %v1612_v19 = vpop.f32.mrf.mxu3  ;;  %v4197_v36 = vsel %vm4120_vm15, %v4849_v28, 0.0  ;;  %v4215_v52 = vsel %vm4133_vm4, %v4844_v14, 0.0  ;;  %vm409_vm7 = vc.u32 %v407_v60, %v403_v51  ;;  %v1348_v1 = vadd.f32 %v3993_v6, %v3926_v20 }
 0x15e   :  { %v1672_v37 = vpop.f32.mrf.mxu2  ;;  %v1632_v26 = vpop.f32.mrf.mxu0  ;;  %v3380_v45 = vpack.i.bf16 %v4197_v36, %v4191_v63  ;;  %v4209_v46 = vsel %vm4129_vm3, %v4850_v11, 0.0  ;;  %v670_v10 = vsel %vm4199_vm12, %v653_v22, %v359_v12  ;;  %v402_v12 = vshrl.u32 %v4147_v9, 16 }
 0x15f   :  { %v1843_v2 = vadd.f32 %v1672_v37, %v4112_v27  ;;  %v1841_v29 = vadd.f32 %v1632_v26, %v3991_v21  ;;  %v1652_v55 = vpop.f32.mrf.mxu1  ;;  %v3385_v25 = vpack.i.bf16 %v4215_v52, %v4209_v46  ;;  %v385_v27 = vadd.s32 %v384_v35, %v375_v62 }
 0x160   :  { %v1842_v14 = vadd.f32 %v1652_v55, %v4108_v40  ;;  %3381 = vrot.lane.b32.xlu0 %v3380_v45, %s3564_s0  ;;  %vm4243_vm6 = vcmp.ne.s32.totalorder %v670_v10, 0  ;;  %v406_v40 = vsel %vm405_vm5, 1, %v4859_v30  ;;  %v410_v32 = vsel %vm409_vm7, 1, %v4859_v30 }
 0x161   :  { %v4231_v21 = vadd.f32 %v4149_v44, %v1843_v2  ;;  %3386 = vrot.lane.b32.xlu1 %v3385_v25, %s3564_s0  ;;  %v4897_v48 = vsel %vm4243_vm6, 4294967295, %v4896_v48  ;;  %v386_v34 = vshrl.u32 %v385_v27, 4  ;;  %v408_v49 = vadd.s32 %v406_v40, %v400_v47 }
 0x162   :  { %v4241_v5 = vadd.f32 %v4149_v44, %v1842_v14  ;;  %4898 = vst [vmem:[#allocation12_spill] sm:$0xff] %v4897_v48  ;;  %v1368_v22 = vadd.f32 %v4025_v31, %v3922_v13  ;;  %v404_v9 = vshrl.u32 %v4173_v42, 16  ;;  %v105_v31 = vshrl.u32 %v3694_v33, 16 }
 0x163   :  { %v4847_v62 = vmax.f32 %v4231_v21, 0.0  ;;  %v387_v14 = vmul.u32 17, %v386_v34  ;;  %v412_v47 = vadd.s32 %v410_v32, %v408_v49  ;;  %v1840_v2 = vadd.f32 %v1612_v19, %v1268_v7 }
 0x164   :  { %v4848_v18 = vmax.f32 %v4241_v5, 0.0  ;;  %v108_v60 = vmul.u32 61680, %v104_v57  ;;  %v4294_v49 = vadd.s32 2048, %v3694_v33  ;;  %v4396_v48 = vadd.s32 640, %v3694_v33 }
 0x165   :  { %v1692_v35 = vpop.f32.mrf.mxu3  ;;  %v4260_v26 = vsel %vm4243_vm6, %v4847_v62, 0.0  ;;  %v388_v13 = vsub.s32 %v4076_v3, %v387_v14  ;;  %v413_v10 = vadd.s32 %v412_v47, %v402_v12  ;;  %v1835_v3 = vadd.f32 %v4091_v41, %v1168_v8 }
 0x166   :  { %v1844_v45 = vadd.f32 %v1692_v35, %v1348_v1  ;;  %v4263_v20 = vpop.f32.mrf.mxu2  ;;  %v1712_v6 = vpop.f32.mrf.mxu0  ;;  %v4269_v51 = vsel %vm4234_vm13, %v4848_v18, 0.0  ;;  %v1488_v12 = vadd.f32 %v4096_v50, %v3961_v43  ;;  %v107_v41 = vmul.u32 61681, %v104_v57 }
 0x167   :  { %v1845_v55 = vadd.f32 %v1712_v6, %v1368_v22  ;;  %v4273_v25 = vpop.f32.mrf.mxu1  ;;  %v3395_v42 = vpack.i.bf16 %v4260_v26, %v4269_v51  ;;  %vm603_vm8 = vcmp.ne.s32.totalorder %v388_v13, 0  ;;  %vm620_vm9 = vcmp.lt.s32.totalorder %v388_v13, 0 }
 0x168   :  { %v4278_v27 = vadd.f32 %v4149_v44, %v1844_v45  ;;  %v414_v19 = vadd.s32 %v413_v10, %v404_v9  ;;  %vm4287_vm10 = vmand %vm620_vm9, %vm603_vm8  ;;  %v654_v40 = vadd.s32 17, %v388_v13  ;;  %v109_v8 = vmul.u32 61681, %v105_v31 }
 0x169   :  { %v4284_v34 = vadd.f32 %v4149_v44, %v1845_v55  ;;  %3396 = vrot.lane.b32.xlu0 %v3395_v42, %s3564_s0  ;;  %v4299_v1 = vadd.f32 %v4149_v44, %v1840_v2  ;;  %v4302_v14 = vadd.f32 %v4149_v44, %v1841_v29  ;;  %v110_v50 = vmul.u32 61680, %v105_v31 }
 0x16a   :  { %4899 = vst [vmem:[#allocation13_spill] sm:$0xff] %v4278_v27  ;;  %v415_v32 = vshrl.u32 %v414_v19, 4  ;;  %v671_v22 = vsel %vm4287_vm10, %v654_v40, %v388_v13  ;;  %v4845_v35 = vmax.f32 %v4278_v27, 0.0  ;;  %v111_v9 = vshll.u32 %v108_v60, 16 }
 0x16b   :  { %4900 = vst [vmem:[#allocation14_spill] sm:$0xff] %v4284_v34  ;;  %v4846_v43 = vmax.f32 %v4284_v34, 0.0  ;;  %vm4308_vm11 = vcmp.ne.s32.totalorder %v671_v22, 0  ;;  %v4903_v57 = vmov 0  ;;  %v112_v6 = vshrl.u32 %v108_v60, 16 }
 0x16c   :  { %v416_v45 = vmul.u32 17, %v415_v32  ;;  %v4904_v57 = vsel %vm4308_vm11, 4294967295, %v4903_v57  ;;  %v113_v2 = vshll.u32 %v109_v8, 16  ;;  %vm115_vm12 = vc.u32 %v107_v41, %v111_v9 }
 0x16d   :  { %v1772_v47 = vpop.f32.mrf.mxu3  ;;  %4905 = vst [vmem:[#allocation15_spill] sm:$0xff] %v4904_v57  ;;  %v117_v13 = vadd.s32 %v111_v9, %v107_v41  ;;  %v568_v10 = vand.u32 65535, %v4294_v49  ;;  %v116_v32 = vsel %vm115_vm12, 1, %v4859_v30  ;;  %v4363_v62 = vadd.s32 1792, %v3694_v33 }
 0x16e   :  { %v1848_v29 = vadd.f32 %v1772_v47, %v4040_v53  ;;  %v1832_v55 = vpop.f32.mrf.mxu2  ;;  %v1792_v42 = vpop.f32.mrf.mxu0  ;;  %v417_v40 = vsub.s32 %v4084_v38, %v416_v45  ;;  %v118_v53 = vadd.s32 %v116_v32, %v110_v50  ;;  %v4331_v38 = vsel %vm4308_vm11, %v4845_v35, 0.0 }
 0x16f   :  { %v1851_v19 = vadd.f32 %v1832_v55, %v1488_v12  ;;  %v1849_v31 = vadd.f32 %v1792_v42, %v4089_v23  ;;  %v1812_v7 = vpop.f32.mrf.mxu1  ;;  %vm119_vm5 = vc.u32 %v117_v13, %v113_v2  ;;  %v114_v12 = vshrl.u32 %v109_v8, 16 }
 0x170   :  { %v4318_v22 = vadd.f32 %v4149_v44, %v1848_v29  ;;  %v1850_v60 = vadd.f32 %v1812_v7, %v4094_v39  ;;  %vm604_vm7 = vcmp.ne.s32.totalorder %v417_v40, 0  ;;  %vm621_vm8 = vcmp.lt.s32.totalorder %v417_v40, 0 }
 0x171   :  { %v4322_v47 = vadd.f32 %v4149_v44, %v1851_v19  ;;  %v4325_v41 = vadd.f32 %v4149_v44, %v1849_v31  ;;  %vm638_vm9 = vmand %vm621_vm8, %vm604_vm7  ;;  %v655_v23 = vadd.s32 17, %v417_v40  ;;  %v120_v39 = vsel %vm119_vm5, 1, %v4859_v30 }
 0x172   :  { %v4336_v9 = vadd.f32 %v4149_v44, %v1850_v60  ;;  %v122_v45 = vadd.s32 %v120_v39, %v118_v53  ;;  %v569_v2 = vshrl.u32 %v4294_v49, 16  ;;  %v571_v42 = vmul.u32 61681, %v568_v10 }
 0x173   :  { %4906 = vst [vmem:[#allocation16_spill] sm:$0xff] %v4322_v47  ;;  %v672_v55 = vsel %vm638_vm9, %v655_v23, %v417_v40  ;;  %v572_v13 = vmul.u32 61680, %v568_v10  ;;  %v4908_v31 = vmov 0  ;;  %v4352_v40 = vadd.f32 %v4149_v44, %v1835_v3 }
 0x174   :  { %4907 = vst [vmem:[#allocation17_spill] sm:$0xff] %v4336_v9  ;;  %vm4341_vm10 = vcmp.ne.s32.totalorder %v672_v55, 0  ;;  %v123_v8 = vadd.s32 %v122_v45, %v112_v6  ;;  %v573_v7 = vmul.u32 61681, %v569_v2  ;;  %v574_v60 = vmul.u32 61680, %v569_v2 }
 0x175   :  { %v4909_v31 = vsel %vm4341_vm10, 4294967295, %v4908_v31  ;;  %v4349_v32 = vsel %vm4341_vm10, %v4846_v43, 0.0  ;;  %v575_v53 = vshll.u32 %v572_v13, 16  ;;  %v576_v39 = vshrl.u32 %v572_v13, 16 }
 0x176   :  { %4910 = vst [vmem:[#allocation18_spill] sm:$0xff] %v4909_v31  ;;  %v3400_v10 = vpack.i.bf16 %v4349_v32, %v4331_v38  ;;  %v124_v23 = vadd.s32 %v123_v8, %v114_v12  ;;  %v577_v55 = vshll.u32 %v573_v7, 16  ;;  %v578_v35 = vshrl.u32 %v573_v7, 16 }
 0x177   :  { %vm579_vm12 = vc.u32 %v571_v42, %v575_v53  ;;  %v581_v6 = vadd.s32 %v575_v53, %v571_v42  ;;  %v4357_v45 = vadd.s32 1664, %v3694_v33  ;;  %v510_v7 = vand.u32 65535, %v4363_v62 }
 0x178   :  { %3401 = vrot.lane.b32.xlu1 %v3400_v10, %s3564_s0  ;;  %v125_v43 = vshrl.u32 %v124_v23, 4  ;;  %v580_v2 = vsel %vm579_vm12, 1, %v4859_v30  ;;  %v511_v53 = vshrl.u32 %v4363_v62, 16  ;;  %v4973_v61 = vmax.f32 %v4167_v17, 0.0 }
 0x179   :  { %v582_v18 = vadd.s32 %v580_v2, %v574_v60  ;;  %vm583_vm5 = vc.u32 %v581_v6, %v577_v55  ;;  %v481_v12 = vand.u32 65535, %v4357_v45  ;;  %v482_v13 = vshrl.u32 %v4357_v45, 16 }
 0x17a   :  { %v126_v42 = vmul.u32 17, %v125_v43  ;;  %v584_v8 = vsel %vm583_vm5, 1, %v4859_v30  ;;  %v4371_v60 = vmul.u32 61680, %v510_v7  ;;  %v4374_v55 = vadd.s32 1920, %v3694_v33 }
 0x17b   :  { %v586_v10 = vadd.s32 %v584_v8, %v582_v18  ;;  %v484_v23 = vmul.u32 61681, %v481_v12  ;;  %v485_v28 = vmul.u32 61680, %v481_v12  ;;  %v486_v11 = vmul.u32 61681, %v482_v13 }
 0x17c   :  { %v127_v15 = vsub.s32 %v3694_v33, %v126_v42  ;;  %v487_v19 = vmul.u32 61680, %v482_v13  ;;  %v513_v50 = vmul.u32 61681, %v510_v7  ;;  %v515_v8 = vmul.u32 61681, %v511_v53 }
 0x17d   :  { %v587_v6 = vadd.s32 %v586_v10, %v576_v39  ;;  %v488_v43 = vshll.u32 %v485_v28, 16  ;;  %v490_v2 = vshll.u32 %v486_v11, 16  ;;  %v489_v3 = vshrl.u32 %v485_v28, 16  ;;  %v4989_v37 = vld [vmem:[#allocation18_spill] sm:$0xff] }
 0x17e   :  { %vm594_vm7 = vcmp.ne.s32.totalorder %v127_v15, 0  ;;  %vm611_vm8 = vcmp.lt.s32.totalorder %v127_v15, 0  ;;  %v645_v29 = vadd.s32 17, %v127_v15  ;;  %v516_v31 = vmul.u32 61680, %v511_v53 }
 0x17f   :  { %v588_v18 = vadd.s32 %v587_v6, %v578_v35  ;;  %vm628_vm9 = vmand %vm611_vm8, %vm594_vm7  ;;  %vm492_vm12 = vc.u32 %v484_v23, %v488_v43  ;;  %v494_v12 = vadd.s32 %v488_v43, %v484_v23  ;;  %v517_v34 = vshll.u32 %v4371_v60, 16 }
 0x180   :  { %v662_v42 = vsel %vm628_vm9, %v645_v29, %v127_v15  ;;  %v493_v13 = vsel %vm492_vm12, 1, %v4859_v30  ;;  %v4913_v28 = vmax.f32 %v4352_v40, 0.0  ;;  %v491_v10 = vshrl.u32 %v486_v11, 16 }
 0x181   :  { %v589_v57 = vshrl.u32 %v588_v18, 4  ;;  %vm4378_vm5 = vcmp.ne.s32.totalorder %v662_v42, 0  ;;  %v495_v7 = vadd.s32 %v493_v13, %v487_v19  ;;  %vm496_vm2 = vc.u32 %v494_v12, %v490_v2 }
 0x182   :  { %v4386_v35 = vsel %vm4378_vm5, %v4913_v28, 0.0  ;;  %v497_v15 = vsel %vm496_vm2, 1, %v4859_v30  ;;  %v519_v29 = vshll.u32 %v515_v8, 16  ;;  %v518_v6 = vshrl.u32 %v4371_v60, 16 }
 0x183   :  { %v590_v53 = vmul.u32 17, %v589_v57  ;;  %v499_v23 = vadd.s32 %v497_v15, %v495_v7  ;;  %vm521_vm7 = vc.u32 %v513_v50, %v517_v34  ;;  %v523_v18 = vadd.s32 %v517_v34, %v513_v50 }
 0x184   :  { %v522_v43 = vsel %vm521_vm7, 1, %v4859_v30  ;;  %v539_v19 = vand.u32 65535, %v4374_v55  ;;  %v540_v2 = vshrl.u32 %v4374_v55, 16  ;;  %v520_v13 = vshrl.u32 %v515_v8, 16 }
 0x185   :  { %v591_v12 = vsub.s32 %v4294_v49, %v590_v53  ;;  %v500_v42 = vadd.s32 %v499_v23, %v489_v3  ;;  %v524_v11 = vadd.s32 %v522_v43, %v516_v31  ;;  %vm525_vm8 = vc.u32 %v523_v18, %v519_v29 }
 0x186   :  { %v542_v28 = vmul.u32 61681, %v539_v19  ;;  %v543_v27 = vmul.u32 61680, %v539_v19  ;;  %v544_v57 = vmul.u32 61681, %v540_v2  ;;  %v526_v34 = vsel %vm525_vm8, 1, %v4859_v30 }
 0x187   :  { %vm610_vm2 = vcmp.ne.s32.totalorder %v591_v12, 0  ;;  %vm627_vm9 = vcmp.lt.s32.totalorder %v591_v12, 0  ;;  %v661_v60 = vadd.s32 17, %v591_v12  ;;  %v501_v7 = vadd.s32 %v500_v42, %v491_v10 }
 0x188   :  { %vm644_vm12 = vmand %vm627_vm9, %vm610_vm2  ;;  %v545_v50 = vmul.u32 61680, %v540_v2  ;;  %v546_v15 = vshll.u32 %v543_v27, 16  ;;  %v528_v8 = vadd.s32 %v526_v34, %v524_v11  ;;  %v548_v31 = vshll.u32 %v544_v57, 16 }
 0x189   :  { %v678_v49 = vsel %vm644_vm12, %v661_v60, %v591_v12  ;;  %v502_v3 = vshrl.u32 %v501_v7, 4  ;;  %v4914_v29 = vmov 0  ;;  %v547_v53 = vshrl.u32 %v543_v27, 16 }
 0x18a   :  { %vm4398_vm7 = vcmp.ne.s32.totalorder %v678_v49, 0  ;;  %vm550_vm1 = vc.u32 %v542_v28, %v546_v15  ;;  %v552_v23 = vadd.s32 %v546_v15, %v542_v28  ;;  %v4917_v10 = vmax.f32 %v4322_v47, 0.0 }
 0x18b   :  { %v4915_v29 = vsel %vm4398_vm7, 4294967295, %v4914_v29  ;;  %v503_v18 = vmul.u32 17, %v502_v3  ;;  %v529_v19 = vadd.s32 %v528_v8, %v518_v6  ;;  %v551_v2 = vsel %vm550_vm1, 1, %v4859_v30 }
 0x18c   :  { %4916 = vst [vmem:[#allocation19_spill] sm:$0xff] %v4915_v29  ;;  %v4406_v43 = vsel %vm4398_vm7, %v4917_v10, 0.0  ;;  %v553_v42 = vadd.s32 %v551_v2, %v545_v50  ;;  %vm554_vm8 = vc.u32 %v552_v23, %v548_v31  ;;  %v4412_v11 = vadd.s32 768, %v3694_v33 }
 0x18d   :  { %v3375_v12 = vpack.i.bf16 %v4406_v43, %v4386_v35  ;;  %v504_v27 = vsub.s32 %v4357_v45, %v503_v18  ;;  %v530_v28 = vadd.s32 %v529_v19, %v520_v13  ;;  %v555_v60 = vsel %vm554_vm8, 1, %v4859_v30 }
 0x18e   :  { %v249_v7 = vand.u32 65535, %v4396_v48  ;;  %v549_v6 = vshrl.u32 %v544_v57, 16  ;;  %v557_v34 = vadd.s32 %v555_v60, %v553_v42  ;;  %v250_v15 = vshrl.u32 %v4396_v48, 16 }
 0x18f   :  { %3376 = vrot.lane.b32.xlu2 %v3375_v12, %s3564_s0  ;;  %v278_v49 = vand.u32 65535, %v4412_v11  ;;  %v531_v50 = vshrl.u32 %v530_v28, 4  ;;  %vm607_vm1 = vcmp.ne.s32.totalorder %v504_v27, 0  ;;  %vm624_vm2 = vcmp.lt.s32.totalorder %v504_v27, 0 }
 0x190   :  { %v658_v3 = vadd.s32 17, %v504_v27  ;;  %vm641_vm9 = vmand %vm624_vm2, %vm607_vm1  ;;  %v558_v8 = vadd.s32 %v557_v34, %v547_v53  ;;  %v252_v45 = vmul.u32 61681, %v249_v7  ;;  %v253_v13 = vmul.u32 61680, %v249_v7 }
 0x191   :  { %v254_v31 = vmul.u32 61681, %v250_v15  ;;  %v532_v10 = vmul.u32 17, %v531_v50  ;;  %v279_v57 = vshrl.u32 %v4412_v11, 16  ;;  %v255_v2 = vmul.u32 61680, %v250_v15 }
 0x192   :  { %v675_v18 = vsel %vm641_vm9, %v658_v3, %v504_v27  ;;  %v559_v19 = vadd.s32 %v558_v8, %v549_v6  ;;  %v256_v12 = vshll.u32 %v253_v13, 16  ;;  %v281_v42 = vmul.u32 61681, %v278_v49 }
 0x193   :  { %v533_v28 = vsub.s32 %v4363_v62, %v532_v10  ;;  %vm4423_vm12 = vcmp.ne.s32.totalorder %v675_v18, 0  ;;  %v4918_v60 = vmov 0  ;;  %v257_v53 = vshrl.u32 %v253_v13, 16 }
 0x194   :  { %v4919_v60 = vsel %vm4423_vm12, 4294967295, %v4918_v60  ;;  %v258_v34 = vshll.u32 %v254_v31, 16  ;;  %v560_v7 = vshrl.u32 %v559_v19, 4  ;;  %vm260_vm8 = vc.u32 %v252_v45, %v256_v12 }
 0x195   :  { %v262_v30 = vadd.s32 %v256_v12, %v252_v45  ;;  %v282_v23 = vmul.u32 61680, %v278_v49  ;;  %vm608_vm1 = vcmp.ne.s32.totalorder %v533_v28, 0  ;;  %vm625_vm2 = vcmp.lt.s32.totalorder %v533_v28, 0 }
 0x196   :  { %v659_v27 = vadd.s32 17, %v533_v28  ;;  %v4920_v50 = vmov 0   ;;  %vm642_vm9 = vmand %vm625_vm2, %vm608_vm1  ;;  %v561_v15 = vmul.u32 17, %v560_v7  ;;  %v283_v62 = vmul.u32 61681, %v279_v57 }
 0x197   :  { %v261_v6 = vsel %vm260_vm8, 1, %v4920_v50  ;;  %vm264_vm0 = vc.u32 %v262_v30, %v258_v34  ;;  %v4921_v10 = vmax.f32 %v4318_v22, 0.0  ;;  %v285_v49 = vshll.u32 %v282_v23, 16 }
 0x198   :  { %v263_v3 = vadd.s32 %v261_v6, %v255_v2  ;;  %v676_v8 = vsel %vm642_vm9, %v659_v27, %v533_v28  ;;  %v265_v45 = vsel %vm264_vm0, 1, %v4920_v50  ;;  %v4922_v18 = vmov 0 }
 0x199   :  { %v4432_v13 = vsel %vm4423_vm12, %v4921_v10, 0.0  ;;  %vm4435_vm7 = vcmp.ne.s32.totalorder %v676_v8, 0  ;;  %v562_v19 = vsub.s32 %v4374_v55, %v561_v15  ;;  %v284_v2 = vmul.u32 61680, %v279_v57 }
 0x19a   :  { %v4923_v18 = vsel %vm4435_vm7, 4294967295, %v4922_v18  ;;  %v267_v12 = vadd.s32 %v265_v45, %v263_v3  ;;  %v4925_v30 = vmax.f32 %v4325_v41, 0.0  ;;  %v259_v34 = vshrl.u32 %v254_v31, 16 }
 0x19b   :  { %4924 = vst [vmem:[#allocation20_spill] sm:$0xff] %v4923_v18  ;;  %v287_v7 = vshll.u32 %v283_v62, 16  ;;  %vm289_vm8 = vc.u32 %v281_v42, %v285_v49  ;;  %vm609_vm0 = vcmp.ne.s32.totalorder %v562_v19, 0  ;;  %vm626_vm1 = vcmp.lt.s32.totalorder %v562_v19, 0 }
 0x19c   :  { %v4444_v28 = vsel %vm4435_vm7, %v4925_v30, 0.0  ;;  %v660_v6 = vadd.s32 17, %v562_v19  ;;  %vm643_vm2 = vmand %vm626_vm1, %vm609_vm0  ;;  %v268_v8 = vadd.s32 %v267_v12, %v257_v53  ;;  %v290_v55 = vsel %vm289_vm8, 1, %v4920_v50 }
 0x19d   :  { %v3410_v27 = vpack.i.bf16 %v4444_v28, %v4432_v13  ;;  %v291_v57 = vadd.s32 %v285_v49, %v281_v42  ;;  %v3420_v15 = vpack.i.bf16 %v4209_v46, %v4197_v36  ;;  %v292_v31 = vadd.s32 %v290_v55, %v284_v2 }
 0x19e   :  { %v677_v3 = vsel %vm643_vm2, %v660_v6, %v562_v19  ;;  %v4453_v10 = vadd.s32 1408, %v3694_v33  ;;  %v4456_v45 = vadd.s32 1536, %v3694_v33  ;;  %v4926_v30 = vmov 0 }
 0x19f   :  { %3411 = vrot.lane.b32.xlu0 %v3410_v27, %s3564_s0  ;;  %vm4458_vm9 = vcmp.ne.s32.totalorder %v677_v3, 0  ;;  %v269_v53 = vadd.s32 %v268_v8, %v259_v34  ;;  %v286_v12 = vshrl.u32 %v282_v23, 16  ;;  %vm293_vm8 = vc.u32 %v291_v57, %v287_v7 }
 0x1a0   :  { %v4927_v30 = vsel %vm4458_vm9, 4294967295, %v4926_v30  ;;  %v4929_v42 = vmax.f32 %v4336_v9, 0.0  ;;  %v294_v46 = vsel %vm293_vm8, 1, %v4920_v50  ;;  %v423_v49 = vand.u32 65535, %v4453_v10 }
 0x1a1   :  { %4928 = vst [vmem:[#allocation21_spill] sm:$0xff] %v4927_v30  ;;  %v424_v19 = vshrl.u32 %v4453_v10, 16  ;;  %v270_v2 = vshrl.u32 %v269_v53, 4  ;;  %v288_v27 = vshrl.u32 %v283_v62, 16  ;;  %v296_v34 = vadd.s32 %v294_v46, %v292_v31 }
 0x1a2   :  { %v4466_v36 = vsel %vm4458_vm9, %v4929_v42, 0.0  ;;  %v452_v23 = vand.u32 65535, %v4456_v45  ;;  %v426_v7 = vmul.u32 61681, %v423_v49  ;;  %v427_v6 = vmul.u32 61680, %v423_v49 }
 0x1a3   :  { %1973 = vrot.lane.b32.xlu1 %v4466_v36, %s3564_s0  ;;  %v428_v8 = vmul.u32 61681, %v424_v19  ;;  %v271_v57 = vmul.u32 17, %v270_v2  ;;  %v297_v3 = vadd.s32 %v296_v34, %v286_v12  ;;  %v453_v42 = vshrl.u32 %v4456_v45, 16 }
 0x1a4   :  { %v429_v47 = vmul.u32 61680, %v424_v19  ;;  %v430_v30 = vshll.u32 %v427_v6, 16  ;;  %v455_v31 = vmul.u32 61681, %v452_v23  ;;  %v456_v46 = vmul.u32 61680, %v452_v23 }
 0x1a5   :  { %v432_v9 = vshll.u32 %v428_v8, 16  ;;  %v272_v53 = vsub.s32 %v4396_v48, %v271_v57  ;;  %v298_v62 = vadd.s32 %v297_v3, %v288_v27  ;;  %v431_v49 = vshrl.u32 %v427_v6, 16 }
 0x1a6   :  { %vm434_vm0 = vc.u32 %v426_v7, %v430_v30  ;;  %v436_v18 = vadd.s32 %v430_v30, %v426_v7  ;;  %v457_v55 = vmul.u32 61681, %v453_v42  ;;  %v458_v34 = vmul.u32 61680, %v453_v42 }
 0x1a7   :  { %3421 = vrot.lane.b32.xlu0 %v3420_v15, %s3565_s3  ;;  %v299_v2 = vshrl.u32 %v298_v62, 4  ;;  %vm599_vm1 = vcmp.ne.s32.totalorder %v272_v53, 0  ;;  %vm616_vm2 = vcmp.lt.s32.totalorder %v272_v53, 0  ;;  %v650_v12 = vadd.s32 17, %v272_v53 }
 0x1a8   :  { %vm633_vm8 = vmand %vm616_vm2, %vm599_vm1  ;;  %v435_v19 = vsel %vm434_vm0, 1, %v4920_v50  ;;  %vm438_vm9 = vc.u32 %v436_v18, %v432_v9  ;;  %v459_v29 = vshll.u32 %v456_v46, 16  ;;  %v433_v30 = vshrl.u32 %v428_v8, 16 }
 0x1a9   :  { %v300_v48 = vmul.u32 17, %v299_v2  ;;  %v667_v27 = vsel %vm633_vm8, %v650_v12, %v272_v53  ;;  %v437_v57 = vadd.s32 %v435_v19, %v429_v47  ;;  %v439_v23 = vsel %vm438_vm9, 1, %v4920_v50 }
 0x1aa   :  { %vm4481_vm7 = vcmp.ne.s32.totalorder %v667_v27, 0  ;;  %v461_v7 = vshll.u32 %v457_v55, 16  ;;  %vm463_vm12 = vc.u32 %v455_v31, %v459_v29  ;;  %v4932_v3 = vmax.f32 %v4299_v1, 0.0 }
 0x1ab   :  { %v301_v6 = vsub.s32 %v4412_v11, %v300_v48  ;;  %v441_v18 = vadd.s32 %v439_v23, %v437_v57  ;;  %v464_v42 = vsel %vm463_vm12, 1, %v4920_v50  ;;  %v465_v53 = vadd.s32 %v459_v29, %v455_v31 }
 0x1ac   :  { %v1931_v9 = vsel %vm4481_vm7, %v4932_v3, 0.0  ;;  %v466_v62 = vadd.s32 %v464_v42, %v458_v34  ;;  %v3435_v2 = vpack.i.bf16 %v4331_v38, %v4260_v26  ;;  %v460_v11 = vshrl.u32 %v456_v46, 16 }
 0x1ad   :  { %v3425_v47 = vpack.i.bf16 %v1931_v9, %v4215_v52  ;;  %vm600_vm9 = vcmp.ne.s32.totalorder %v301_v6, 0  ;;  %vm617_vm0 = vcmp.lt.s32.totalorder %v301_v6, 0  ;;  %v651_v8 = vadd.s32 17, %v301_v6 }
 0x1ae   :  { %v442_v12 = vadd.s32 %v441_v18, %v431_v49  ;;  %vm634_vm1 = vmand %vm617_vm0, %vm600_vm9  ;;  %vm467_vm2 = vc.u32 %v465_v53, %v461_v7  ;;  %v1846_v19 = vadd.f32 %v4273_v25, %v4043_v54  ;;  %v462_v38 = vshrl.u32 %v457_v55, 16 }
 0x1af   :  { %3426 = vrot.lane.b32.xlu1 %v3425_v47, %s3565_s3  ;;  %3436 = vrot.lane.b32.xlu0 %v3435_v2, %s3565_s3  ;;  %v668_v52 = vsel %vm634_vm1, %v651_v8, %v301_v6  ;;  %v468_v31 = vsel %vm467_vm2, 1, %v4920_v50  ;;  %v4935_v34 = vmax.f32 %v4302_v14, 0.0  ;;  %v1847_v27 = vadd.f32 %v4263_v20, %v4056_v4 }
 0x1b0   :  { %v443_v29 = vadd.s32 %v442_v12, %v433_v30  ;;  %vm4499_vm12 = vcmp.ne.s32.totalorder %v668_v52, 0  ;;  %v470_v49 = vadd.s32 %v468_v31, %v466_v62  ;;  %v4510_v57 = vadd.f32 %v4149_v44, %v1846_v19  ;;  %v4551_v31 = vld [vmem:[#allocation7] sm:$0xff] }
 0x1b1   :  { %v1932_v46 = vsel %vm4499_vm12, %v4935_v34, 0.0  ;;  %v3450_v23 = vpack.i.bf16 %v4466_v36, %v4444_v28  ;;  %v4517_v7 = vadd.f32 %v4149_v44, %v1847_v27  ;;  %v4936_v36 = vmov 0 }
 0x1b2   :  { %v444_v48 = vshrl.u32 %v443_v29, 4  ;;  %v3390_v54 = vpack.i.bf16 %v1932_v46, %v1931_v9  ;;  %v471_v25 = vadd.s32 %v470_v49, %v460_v11  ;;  %v1886_v4 = vmax.f32 %v4510_v57, 0.0 }
 0x1b3   :  { %v1887_v44 = vmax.f32 %v4517_v7, 0.0  ;;  %v3430_v2 = vpack.i.bf16 %v4269_v51, %v1932_v46  ;;  %v4976_v39 = vmax.f32 %v4302_v14, 0.0  ;;  %v4978_v59 = vmax.f32 %v4241_v5, 0.0  ;;  %v4987_v5 = vld [vmem:[#allocation14_spill] sm:$0xff]  ;;  %v5002_v7 = vld [vmem:[#allocation17_spill] sm:$0xff] }
 0x1b4   :  { %v445_v50 = vmul.u32 17, %v444_v48  ;;  %3391 = vrot.lane.b32.xlu2 %v3390_v54, %s3564_s0  ;;  %v472_v55 = vadd.s32 %v471_v25, %v462_v38  ;;  %v4981_v0 = vmax.f32 %v4231_v21, 0.0  ;;  %v4988_v15 = vmax.f32 %v4987_v5, 0.0 }
 0x1b5   :  { %v4996_v26 = vmax.f32 %v4318_v22, 0.0  ;;  %v5004_v22 = vld [vmem:[#allocation21_spill] sm:$0xff] }
 0x1b6   :  { %v446_v30 = vsub.s32 %v4453_v10, %v445_v50  ;;  %v473_v6 = vshrl.u32 %v472_v55, 4 }
 0x1b7   :  { %3451 = vrot.lane.b32.xlu0 %v3450_v23, %s3565_s3 }
 0x1b8   :  { %vm605_vm8 = vcmp.ne.s32.totalorder %v446_v30, 0  ;;  %vm622_vm9 = vcmp.lt.s32.totalorder %v446_v30, 0  ;;  %v656_v20 = vadd.s32 17, %v446_v30  ;;  %v474_v3 = vmul.u32 17, %v473_v6 }
 0x1b9   :  { %vm639_vm0 = vmand %vm622_vm9, %vm605_vm8 }
 0x1ba   :  { %v673_v9 = vsel %vm639_vm0, %v656_v20, %v446_v30  ;;  %v475_v28 = vsub.s32 %v4456_v45, %v474_v3  ;;  %v4938_v45 = vmov 0 }
 0x1bb   :  { %vm4522_vm1 = vcmp.ne.s32.totalorder %v673_v9, 0 }
 0x1bc   :  { %v4937_v36 = vsel %vm4522_vm1, 4294967295, %v4936_v36  ;;  %v1937_v10 = vsel %vm4522_vm1, %v1886_v4, 0.0  ;;  %vm606_vm2 = vcmp.ne.s32.totalorder %v475_v28, 0  ;;  %vm623_vm10 = vcmp.lt.s32.totalorder %v475_v28, 0 }
 0x1bd   :  { %v657_v18 = vadd.s32 17, %v475_v28  ;;  %v3440_v42 = vpack.i.bf16 %v1937_v10, %v4349_v32  ;;  %vm640_vm8 = vmand %vm623_vm10, %vm606_vm2  ;;  %v3415_v32 = vpack.i.bf16 %v4191_v63, %v4386_v35  ;;  %vm4940_vm10 = vcmp.lt.s32.totalorder %v3694_v33, 1 }
 0x1be   :  { %vm4941_vm0 = vmmov %vm4940_vm10  ;;  %vm4942_vm2 = vcmask 64512   ;;  %vm4955_vm1 = vcmask 64512  }
 0x1bf   :  { %v674_v47 = vsel %vm640_vm8, %v657_v18, %v475_v28  ;;  %3441 = vrot.lane.b32.xlu1 %v3440_v42, %s3565_s3  ;;  %vm4943_vm8 = vmmov %vm4942_vm2 }
 0x1c0   :  { %vm4533_vm9 = vcmp.ne.s32.totalorder %v674_v47, 0 }
 0x1c1   :  { %v4939_v45 = vsel %vm4533_vm9, 4294967295, %v4938_v45  ;;  %v1938_v53 = vsel %vm4533_vm9, %v1887_v44, 0.0  ;;  %vm4945_vm9 = vmmov %vm4941_vm0 }
 0x1c2   :  { %v3405_v62 = vpack.i.bf16 %v1938_v53, %v1937_v10  ;;  %v3445_v51 = vpack.i.bf16 %v4432_v13, %v1938_v53 }
 0x1c4   :  { %3406 = vrot.lane.b32.xlu2 %v3405_v62, %s3564_s0 }
 0x1c7   :  { %2026 = vrot.lane.b32.xlu1 %v4406_v43, %s3565_s3 }
 0x1cc   :  { %3416 = vrot.lane.b32.xlu2 %v3415_v32, %s3565_s3 }
 0x1d2   :  { %v3382_v8 = vpop.permute.xlu0 %3381 }
 0x1d3   :  { %v3384_v12 = vunpack.i.h.bf16 %v3382_v8  ;;  %v3383_v11 = vunpack.i.l.bf16 %v3382_v8  ;;  %v3387_v19 = vpop.permute.xlu1 %3386  ;;  %v4961_v8 = vmax.f32 %v4155_v56, 0.0  ;;  %v4968_v56 = vmax.f32 %v4177_v24, 0.0 }
 0x1d4   :  { %3431 = vrot.lane.b32.xlu2 %v3430_v2, %s3565_s3  ;;  %v3388_v52 = vunpack.i.l.bf16 %v3387_v19  ;;  %v3389_v35 = vunpack.i.h.bf16 %v3387_v19  ;;  %v4974_v24 = vmax.f32 %v4299_v1, 0.0 }
 0x1d5   :  { %v1991_v29 = vsel %vm4940_vm10, %v3383_v11, %v3384_v12  ;;  %vm4944_vm10 = vmmov %vm4941_vm0 }
 0x1d6   :  { %2106 = vmatpush.msrb.mxu1 %v1991_v29  ;;  %v1990_v63 = vsel %vm4941_vm0, %v3384_v12, %v3388_v52  ;;  %v1989_v48 = vsel %vm4945_vm9, %v3388_v52, %v3389_v35 }
 0x1d7   :  { %2126 = vmatpush.msrb.mxu2 %v1990_v63  ;;  %3224 = vmatmul.msk.f32.vlgmr.msrb.gmra.mxu1 %vm4942_vm2, %v4551_v31 }
 0x1d8   :  { %3225 = vmatmul.msk.f32.vlgmr.msrb.gmra.mxu2 %vm4943_vm8, %v4551_v31  ;;  %vm4946_vm8 = vmmov %vm4942_vm2 }
 0x1db   :  { %v3397_v13 = vpop.permute.xlu0 %3396 }
 0x1dc   :  { %3446 = vrot.lane.b32.xlu2 %v3445_v51, %s3565_s3  ;;  %v3399_v27 = vunpack.i.h.bf16 %v3397_v13  ;;  %v3398_v54 = vunpack.i.l.bf16 %v3397_v13  ;;  %v4971_v51 = vmax.f32 %v4352_v40, 0.0  ;;  %v2046_v40 = vld [vmem:[#allocation7 + $0x8] sm:$0xff] }
 0x1e9   :  { %v3377_v43 = vpop.permute.xlu2 %3376 }
 0x1ea   :  { %v3379_v38 = vunpack.i.h.bf16 %v3377_v43  ;;  %v3378_v49 = vunpack.i.l.bf16 %v3377_v43  ;;  %v3402_v50 = vpop.permute.xlu1 %3401  ;;  %v5000_v43 = vld [vmem:[#allocation20_spill] sm:$0xff] }
 0x1eb   :  { %v3404_v55 = vunpack.i.h.bf16 %v3402_v50  ;;  %v3403_v30 = vunpack.i.l.bf16 %v3402_v50 }
 0x1ec   :  { %v1993_v34 = vsel %vm4944_vm10, %v3379_v38, %v3378_v49  ;;  %v1992_v46 = vsel %vm4941_vm0, %v3378_v49, %v3383_v11  ;;  %vm4947_vm10 = vmmov %vm4941_vm0 }
 0x1ed   :  { %2066 = vmatpush.msra.mxu3 %v1993_v34  ;;  %2086 = vmatpush.msrb.mxu0 %v1992_v46  ;;  %v1985_v25 = vsel %vm4947_vm10, %v3398_v54, %v3399_v27  ;;  %vm4948_vm0 = vmmov %vm4942_vm2  ;;  %v5011_v34 = vld [vmem:[#allocation19_spill] sm:$0xff] }
 0x1ee   :  { %3222 = vmatmul.msk.f32.vlgmr.msra.gmra.mxu3 %vm4942_vm2, %v4551_v31  ;;  %3223 = vmatmul.msk.f32.vlgmr.msrb.gmra.mxu0 %vm4946_vm8, %v4551_v31  ;;  %vm4949_vm9 = vmmov %vm4948_vm0 }
 0x1ef   :  { %2146 = vmatpush.msrb.mxu3 %v1989_v48  ;;  %vm4950_vm2 = vmmov %vm4947_vm10 }
 0x1f0   :  { %vm4951_vm8 = vmmov %vm4950_vm2 }
 0x1f1   :  { %2226 = vmatpush.msra.mxu3 %v1985_v25  ;;  %vm4952_vm10 = vmmov %vm4950_vm2 }
 0x1f6   :  { %3226 = vmatmul.msk.f32.vlgmr.msrb.gmra.mxu3 %vm4948_vm0, %v4551_v31  ;;  %vm4953_vm0 = vmmov %vm4950_vm2 }
 0x1f7   :  { %v1984_v42 = vsel %vm4953_vm0, %v3399_v27, %v3403_v30 }
 0x1fe   :  { %3230 = vmatmul.msk.f32.vlgmr.msra.gmra.mxu3 %vm4949_vm9, %v4551_v31  ;;  %vm4954_vm9 = vmmov %vm4953_vm0 }
 0x1ff   :  { %v1983_v47 = vsel %vm4954_vm9, %v3403_v30, %v3404_v55 }
 0x20e   :  { %v3392_v23 = vpop.permute.xlu2 %3391 }
 0x20f   :  { %v3394_v6 = vunpack.i.h.bf16 %v3392_v23  ;;  %v3393_v20 = vunpack.i.l.bf16 %v3392_v23 }
 0x211   :  { %v3412_v3 = vpop.permute.xlu0 %3411  ;;  %v1988_v9 = vsel %vm4950_vm2, %v3389_v35, %v3393_v20  ;;  %v1987_v28 = vsel %vm4951_vm8, %v3393_v20, %v3394_v6  ;;  %v1986_v10 = vsel %vm4952_vm10, %v3394_v6, %v3398_v54  ;;  %vm4956_vm2 = vmmov %vm4955_vm1  ;;  %v4972_v35 = vmax.f32 %v4170_v16, 0.0  ;;  %v4983_v16 = vld [vmem:[#allocation13_spill] sm:$0xff] }
 0x212   :  { %v3414_v18 = vunpack.i.h.bf16 %v3412_v3  ;;  %2166 = vmatpush.msra.mxu0 %v1988_v9  ;;  %2186 = vmatpush.msra.mxu1 %v1987_v28  ;;  %v3413_v53 = vunpack.i.l.bf16 %v3412_v3  ;;  %vm4957_vm8 = vmmov %vm4955_vm1  ;;  %v4984_v1 = vmax.f32 %v4983_v16, 0.0  ;;  %v2735_v28 = vld [vmem:[#allocation7 + $0x10] sm:$0xff] }
 0x213   :  { %2206 = vmatpush.msra.mxu2 %v1986_v10  ;;  %3227 = vmatmul.msk.f32.vlgmr.msra.gmra.mxu0 %vm4955_vm1, %v4551_v31  ;;  %vm4958_vm10 = vmmov %vm4953_vm0 }
 0x214   :  { %3228 = vmatmul.msk.f32.vlgmr.msra.gmra.mxu1 %vm4956_vm2, %v4551_v31  ;;  %3229 = vmatmul.msk.f32.vlgmr.msra.gmra.mxu2 %vm4957_vm8, %v4551_v31  ;;  %v1979_v62 = vsel %vm4958_vm10, %v3413_v53, %v3414_v18  ;;  %vm4959_vm0 = vmmov %vm4955_vm1 }
 0x215   :  { %2246 = vmatpush.msrb.mxu0 %v1984_v42  ;;  %2266 = vmatpush.msrb.mxu1 %v1983_v47  ;;  %vm4960_vm9 = vmmov %vm4959_vm0  ;;  %v1974_v32 = vpop.permute.xlu1 %1973 }
 0x216   :  { %vm4962_vm1 = vmmov %vm4958_vm10 }
 0x217   :  { %2346 = vmatpush.msra.mxu1 %v1979_v62  ;;  %v1977_v19 = vsel %vm4962_vm1, %v1974_v32, %v3379_v38  ;;  %vm4963_vm2 = vmmov %vm4962_vm1  ;;  %v5009_v38 = vld [vmem:[#allocation16_spill] sm:$0xff] }
 0x218   :  { %vm4964_vm8 = vmmov %vm4962_vm1  ;;  %v5010_v49 = vmax.f32 %v5009_v38, 0.0 }
 0x219   :  { %vm4965_vm10 = vmmov %vm4962_vm1 }
 0x21b   :  { %3231 = vmatmul.msk.f32.vlgmr.msrb.gmra.mxu0 %vm4959_vm0, %v4551_v31  ;;  %vm4966_vm0 = vmmov %vm4962_vm1 }
 0x21c   :  { %3232 = vmatmul.msk.f32.vlgmr.msrb.gmra.mxu1 %vm4960_vm9, %v4551_v31  ;;  %v1978_v58 = vsel %vm4966_vm0, %v3414_v18, %v1974_v32  ;;  %vm4969_vm1 = vmmov %vm4960_vm9  ;;  %vm4997_vm0 = vnez %v4919_v60 }
 0x21d   :  { %3241 = vmatpush.msk.msrb.mxu1 %vm4116_vm14, %v4961_v8  ;;  %vm4967_vm14 = vmmov %vm4960_vm9 }
 0x21e   :  { %v3407_v2 = vpop.permute.xlu2 %3406 }
 0x21f   :  { %v3409_v12 = vunpack.i.h.bf16 %v3407_v2  ;;  %v3408_v11 = vunpack.i.l.bf16 %v3407_v2 }
 0x221   :  { %v1981_v52 = vsel %vm4963_vm2, %v3408_v11, %v3409_v12  ;;  %v1982_v29 = vsel %vm4964_vm8, %v3404_v55, %v3408_v11  ;;  %v1980_v63 = vsel %vm4965_vm10, %v3409_v12, %v3413_v53  ;;  %vm4970_vm2 = vmmov %vm4969_vm1  ;;  %vm4992_vm8 = vnez %v4937_v36  ;;  %v3422_v36 = vpop.permute.xlu0 %3421  ;;  %v3096_v53 = vld [vmem:[%s4842_s4] sm:$0xff]  ;;  %s3567_s4 = smov [#allocation8]  }
 0x222   :  { %2306 = vmatpush.msrb.mxu3 %v1981_v52  ;;  %2286 = vmatpush.msrb.mxu2 %v1982_v29  ;;  %vm4994_vm10 = vmmov %vm4969_vm1  ;;  %v3424_v46 = vunpack.i.h.bf16 %v3422_v36  ;;  %s3158_s12 = sshll.u32 %s3567_s4, 4  ;;  %s3159_s12 = int_to_ptr.vmem [resolvable:$true] %s3158_s12 }
 0x223   :  { %3233 = vmatmul.msk.f32.vlgmr.msrb.gmra.mxu2 %vm4967_vm14, %v4551_v31  ;;  %3234 = vmatmul.msk.f32.vlgmr.msrb.gmra.mxu3 %vm4960_vm9, %v4551_v31  ;;  %vm4998_vm14 = vmmov %vm4969_vm1  ;;  %vm5001_vm9 = vnez %v5000_v43 }
 0x224   :  { %2386 = vmatpush.msra.mxu3 %v1977_v19  ;;  %2326 = vmatpush.msra.mxu0 %v1980_v63 }
 0x225   :  { %2366 = vmatpush.msra.mxu2 %v1978_v58  ;;  %3235 = vmatmul.msk.f32.vlgmr.msra.gmra.mxu0 %vm4969_vm1, %v4551_v31 }
 0x226   :  { %3245 = vmatpush.msk.msrb.mxu3 %vm4129_vm3, %v4968_v56  ;;  %3236 = vmatmul.msk.f32.vlgmr.msra.gmra.mxu1 %vm4970_vm2, %v4551_v31  ;;  %vm4975_vm3 = vmmov %vm4969_vm1  ;;  %v4675_v21 = vpop.permute.xlu2 %3416  ;;  %vm5005_vm2 = vnez %v5004_v22 }
 0x227   :  { %3239 = vmatpush.msk.msrb.mxu0 %vm4378_vm5, %v4971_v51  ;;  %3243 = vmatpush.msk.msrb.mxu2 %vm4120_vm15, %v4972_v35  ;;  %vm4977_vm15 = vmmov %vm4969_vm1  ;;  %v3419_v57 = vunpack.i.h.bf16 %v4675_v21 }
 0x228   :  { %3249 = vmatpush.msk.msra.mxu1 %vm4481_vm7, %v4974_v24  ;;  %vm4980_vm5 = vmmov %vm4969_vm1  ;;  %3099 = vperm.xlu2 %3455, %v3096_v53  }
 0x229   :  { %3247 = vmatpush.msk.msra.mxu0 %vm4133_vm4, %v4973_v61  ;;  %vm4979_vm4 = vmmov %vm4969_vm1  ;;  %v3437_v55 = vpop.permute.xlu0 %3436 }
 0x22a   :  { %vm4986_vm7 = vmmov %vm4969_vm1  ;;  %v3439_v20 = vunpack.i.h.bf16 %v3437_v55  ;;  %v3438_v3 = vunpack.i.l.bf16 %v3437_v55 }
 0x22b   :  { %3237 = vmatmul.msk.f32.vlgmr.msra.gmra.mxu2 %vm4975_vm3, %v4551_v31  ;;  %3238 = vmatmul.msk.f32.vlgmr.msra.gmra.mxu3 %vm4977_vm15, %v4551_v31  ;;  %v4999_v31 = vmax.f32 %v4325_v41, 0.0  ;;  %vm5006_vm3 = vmmov %vm4969_vm1  ;;  %v3423_v41 = vunpack.i.l.bf16 %v3422_v36 }
 0x22c   :  { %3251 = vmatpush.msk.msra.mxu2 %vm4499_vm12, %v4976_v39  ;;  %3253 = vmatpush.msk.msra.mxu3 %vm4234_vm13, %v4978_v59  ;;  %vm4990_vm13 = vnez %v4989_v37  ;;  %vm4991_vm12 = vmmov %vm4969_vm1 }
 0x22d   :  { %3240 = vmatmul.msk.f32.vlgmr.msrb.gmra.mxu0 %vm4979_vm4, %v2046_v40  ;;  %vm5007_vm15 = vmmov %vm4969_vm1  ;;  %vm5008_vm4 = vcmp.lt.s32.totalorder %v3694_v33, 127 }
 0x22e   :  { %3242 = vmatmul.msk.f32.vlgmr.msrb.gmra.mxu1 %vm4980_vm5, %v2046_v40  ;;  %3255 = vmatpush.msk.msrb.mxu0 %vm4243_vm6, %v4981_v0  ;;  %vm4993_vm6 = vmmov %vm4969_vm1  ;;  %vm5012_vm5 = vnez %v5011_v34  ;;  %v3432_v25 = vpop.permute.xlu2 %3431 }
 0x22f   :  { %3257 = vmatpush.msk.msrb.mxu1 %vm4308_vm11, %v4984_v1  ;;  %vm4995_vm11 = vnez %v4939_v45  ;;  %v3427_v45 = vpop.permute.xlu1 %3426  ;;  %v3434_v30 = vunpack.i.h.bf16 %v3432_v25  ;;  %v3433_v6 = vunpack.i.l.bf16 %v3432_v25 }
 0x230   :  { %v3429_v48 = vunpack.i.h.bf16 %v3427_v45  ;;  %v3428_v13 = vunpack.i.l.bf16 %v3427_v45 }
 0x231   :  { %v3452_v19 = vpop.permute.xlu0 %3451 }
 0x232   :  { %v3453_v58 = vunpack.i.l.bf16 %v3452_v19  ;;  %v3454_v56 = vunpack.i.h.bf16 %v3452_v19 }
 0x233   :  { %3244 = vmatmul.msk.f32.vlgmr.msrb.gmra.mxu2 %vm4986_vm7, %v2046_v40  ;;  %3246 = vmatmul.msk.f32.vlgmr.msrb.gmra.mxu3 %vm4991_vm12, %v2046_v40  ;;  %vm5013_vm7 = vmmov %vm4969_vm1 }
 0x234   :  { %3259 = vmatpush.msk.msrb.mxu2 %vm4990_vm13, %v4988_v15  ;;  %3261 = vmatpush.msk.msrb.mxu3 %vm4992_vm8, %v1886_v4  ;;  %v3418_v4 = vunpack.i.l.bf16 %v4675_v21  ;;  %vm5014_vm13 = vmmov %vm5008_vm4 }
 0x235   :  { %3248 = vmatmul.msk.f32.vlgmr.msra.gmra.mxu0 %vm4993_vm6, %v2046_v40  ;;  %v2042_v27 = vsel %vm5014_vm13, %v3419_v57, %v3423_v41  ;;  %vm5015_vm12 = vmmov %vm4969_vm1 }
 0x236   :  { %3250 = vmatmul.msk.f32.vlgmr.msra.gmra.mxu1 %vm4994_vm10, %v2046_v40  ;;  %3263 = vmatpush.msk.msra.mxu0 %vm4995_vm11, %v1887_v44  ;;  %v5003_v44 = vmax.f32 %v5002_v7, 0.0  ;;  %v2043_v60 = vsel %vm5008_vm4, %v3418_v4, %v3419_v57  ;;  %vm5016_vm8 = vmmov %vm5008_vm4  ;;  %v3447_v62 = vpop.permute.xlu2 %3446 }
 0x237   :  { %3265 = vmatpush.msk.msra.mxu1 %vm4997_vm0, %v4996_v26  ;;  %v2041_v54 = vsel %vm5016_vm8, %v3423_v41, %v3424_v46  ;;  %vm5017_vm6 = vmmov %vm4969_vm1  ;;  %v3442_v10 = vpop.permute.xlu1 %3441  ;;  %v3449_v8 = vunpack.i.h.bf16 %v3447_v62  ;;  %v3448_v12 = vunpack.i.l.bf16 %v3447_v62 }
 0x238   :  { %vm5018_vm10 = vmmov %vm4969_vm1  ;;  %v3443_v32 = vunpack.i.l.bf16 %v3442_v10  ;;  %v3444_v2 = vunpack.i.h.bf16 %v3442_v10 }
 0x239   :  { %vm5019_vm11 = vmmov %vm5008_vm4 }
 0x23a   :  { %v2040_v50 = vsel %vm5019_vm11, %v3424_v46, %v3428_v13  ;;  %vm5020_vm0 = vmmov %vm5008_vm4 }
 0x23b   :  { %3252 = vmatmul.msk.f32.vlgmr.msra.gmra.mxu2 %vm4998_vm14, %v2046_v40  ;;  %3254 = vmatmul.msk.f32.vlgmr.msra.gmra.mxu3 %vm4969_vm1, %v2046_v40  ;;  %v2039_v23 = vsel %vm5020_vm0, %v3428_v13, %v3429_v48  ;;  %vm5021_vm14 = vmmov %vm4969_vm1  ;;  %v2031_v63 = vsel %vm5020_vm0, %v3448_v12, %v3449_v8 }
 0x23c   :  { %3267 = vmatpush.msk.msra.mxu2 %vm5001_vm9, %v4999_v31  ;;  %3269 = vmatpush.msk.msra.mxu3 %vm5005_vm2, %v5003_v44  ;;  %vm5022_vm9 = vmmov %vm5020_vm0 }
 0x23d   :  { %3256 = vmatmul.msk.f32.vlgmr.msrb.gmra.mxu0 %vm5006_vm3, %v2046_v40  ;;  %v2038_v9 = vsel %vm5022_vm9, %v3429_v48, %v3433_v6  ;;  %vm5023_vm2 = vmmov %vm5020_vm0 }
 0x23e   :  { %3258 = vmatmul.msk.f32.vlgmr.msrb.gmra.mxu1 %vm5007_vm15, %v2046_v40  ;;  %3271 = vmatpush.msk.msrb.mxu0 %vm5012_vm5, %v5010_v49  ;;  %v2037_v18 = vsel %vm5023_vm2, %v3433_v6, %v3434_v30  ;;  %vm5024_vm3 = vmmov %vm4969_vm1 }
 0x23f   :  { %2754 = vmatpush.msrb.mxu1 %v2043_v60  ;;  %vm5025_vm15 = vmmov %vm4969_vm1  ;;  %v2027_v51 = vpop.permute.xlu1 %2026 }
 0x240   :  { %vm5026_vm4 = vmmov %vm5020_vm0 }
 0x241   :  { %v2036_v42 = vsel %vm5026_vm4, %v3434_v30, %v3438_v3  ;;  %vm5027_vm5 = vmmov %vm5020_vm0 }
 0x242   :  { %v2035_v47 = vsel %vm5027_vm5, %v3438_v3, %v3439_v20  ;;  %vm5029_vm13 = vmmov %vm5020_vm0 }
 0x243   :  { %3260 = vmatmul.msk.f32.vlgmr.msrb.gmra.mxu2 %vm5013_vm7, %v2046_v40  ;;  %3262 = vmatmul.msk.f32.vlgmr.msrb.gmra.mxu3 %vm5015_vm12, %v2046_v40  ;;  %vm5028_vm7 = vmmov %vm4969_vm1  ;;  %v2034_v11 = vsel %vm5029_vm13, %v3439_v20, %v3443_v32 }
 0x244   :  { %2774 = vmatpush.msrb.mxu2 %v2042_v27  ;;  %2794 = vmatpush.msrb.mxu3 %v2041_v54  ;;  %vm5030_vm12 = vmmov %vm4969_vm1 }
 0x245   :  { %3264 = vmatmul.msk.f32.vlgmr.msra.gmra.mxu0 %vm5017_vm6, %v2046_v40  ;;  %vm5031_vm8 = vmmov %vm5020_vm0 }
 0x246   :  { %3266 = vmatmul.msk.f32.vlgmr.msra.gmra.mxu1 %vm5018_vm10, %v2046_v40  ;;  %2814 = vmatpush.msra.mxu0 %v2040_v50  ;;  %v2033_v52 = vsel %vm5031_vm8, %v3443_v32, %v3444_v2  ;;  %vm5032_vm6 = vmmov %vm4969_vm1 }
 0x247   :  { %2834 = vmatpush.msra.mxu1 %v2039_v23  ;;  %vm5033_vm10 = vmmov %vm4969_vm1 }
 0x248   :  { %vm5034_vm11 = vmmov %vm5020_vm0 }
 0x249   :  { %v2032_v29 = vsel %vm5034_vm11, %v3444_v2, %v3448_v12  ;;  %vm5036_vm9 = vmmov %vm5020_vm0 }
 0x24a   :  { %v2030_v35 = vsel %vm5036_vm9, %v3449_v8, %v3453_v58  ;;  %vm5037_vm2 = vmmov %vm5020_vm0 }
 0x24b   :  { %3268 = vmatmul.msk.f32.vlgmr.msra.gmra.mxu2 %vm5021_vm14, %v2046_v40  ;;  %3270 = vmatmul.msk.f32.vlgmr.msra.gmra.mxu3 %vm4969_vm1, %v2046_v40  ;;  %vm5035_vm14 = vmmov %vm4969_vm1  ;;  %v2029_v61 = vsel %vm5037_vm2, %v3453_v58, %v3454_v56 }
 0x24c   :  { %2854 = vmatpush.msra.mxu2 %v2038_v9  ;;  %2874 = vmatpush.msra.mxu3 %v2037_v18  ;;  %vm5040_vm4 = vmmov %vm4969_vm1 }
 0x24d   :  { %3272 = vmatmul.msk.f32.vlgmr.msrb.gmra.mxu0 %vm5024_vm3, %v2046_v40  ;;  %vm5038_vm3 = vmmov %vm5020_vm0 }
 0x24e   :  { %3273 = vmatmul.msk.f32.vlgmr.msrb.gmra.mxu1 %vm5025_vm15, %v2735_v28  ;;  %2894 = vmatpush.msrb.mxu0 %v2036_v42  ;;  %v2028_v24 = vsel %vm5038_vm3, %v3454_v56, %v2027_v51  ;;  %vm5039_vm15 = vmmov %vm5020_vm0 }
 0x24f   :  { %2914 = vmatpush.msrb.mxu1 %v2035_v47  ;;  %v2044_v40 = vsel %vm5039_vm15, %v2027_v51, %v3418_v4  ;;  %vm5041_vm5 = vmmov %vm4969_vm1 }
 0x250   :  { %vm5043_vm13 = vmmov %vm4969_vm1 }
 0x251   :  { %vm5045_vm8 = vmmov %vm4969_vm1 }
 0x252   :  { %vm5048_vm11 = vmmov %vm4969_vm1 }
 0x253   :  { %3274 = vmatmul.msk.f32.vlgmr.msrb.gmra.mxu2 %vm5028_vm7, %v2735_v28  ;;  %3275 = vmatmul.msk.f32.vlgmr.msrb.gmra.mxu3 %vm5030_vm12, %v2735_v28  ;;  %vm5042_vm7 = vmmov %vm4969_vm1 }
 0x254   :  { %2934 = vmatpush.msrb.mxu2 %v2034_v11  ;;  %2954 = vmatpush.msrb.mxu3 %v2033_v52  ;;  %vm5044_vm12 = vmmov %vm4969_vm1  ;;  %v2108_v39 = vpop.f32.mrf.mxu1 }
 0x255   :  { %3276 = vmatmul.msk.f32.vlgmr.msra.gmra.mxu0 %vm5032_vm6, %v2735_v28  ;;  %vm5046_vm6 = vmmov %vm4969_vm1 }
 0x256   :  { %3277 = vmatmul.msk.f32.vlgmr.msra.gmra.mxu1 %vm5033_vm10, %v2735_v28  ;;  %2974 = vmatpush.msra.mxu0 %v2032_v29  ;;  %vm5047_vm10 = vmmov %vm4969_vm1 }
 0x257   :  { %2994 = vmatpush.msra.mxu1 %v2031_v63  ;;  %vm5049_vm0 = vmmov %vm4969_vm1 }
 0x25b   :  { %3278 = vmatmul.msk.f32.vlgmr.msra.gmra.mxu2 %vm5035_vm14, %v2735_v28  ;;  %3279 = vmatmul.msk.f32.vlgmr.msra.gmra.mxu3 %vm4969_vm1, %v2735_v28  ;;  %v2128_v17 = vpop.f32.mrf.mxu2 }
 0x25c   :  { %3014 = vmatpush.msra.mxu2 %v2030_v35  ;;  %3034 = vmatpush.msra.mxu3 %v2029_v61 }
 0x25d   :  { %3280 = vmatmul.msk.f32.vlgmr.msrb.gmra.mxu0 %vm5040_vm4, %v2735_v28 }
 0x25e   :  { %3281 = vmatmul.msk.f32.vlgmr.msrb.gmra.mxu1 %vm5041_vm5, %v2735_v28  ;;  %3054 = vmatpush.msrb.mxu0 %v2028_v24 }
 0x25f   :  { %3074 = vmatpush.msrb.mxu1 %v2044_v40 }
 0x263   :  { %3282 = vmatmul.msk.f32.vlgmr.msrb.gmra.mxu2 %vm5042_vm7, %v2735_v28  ;;  %3283 = vmatmul.msk.f32.vlgmr.msrb.gmra.mxu3 %vm5043_vm13, %v2735_v28 }
 0x265   :  { %3284 = vmatmul.msk.f32.vlgmr.msra.gmra.mxu0 %vm5044_vm12, %v2735_v28 }
 0x266   :  { %3285 = vmatmul.msk.f32.vlgmr.msra.gmra.mxu1 %vm5045_vm8, %v2735_v28 }
 0x26b   :  { %3286 = vmatmul.msk.f32.vlgmr.msra.gmra.mxu2 %vm5046_vm6, %v2735_v28  ;;  %3287 = vmatmul.msk.f32.vlgmr.msra.gmra.mxu3 %vm5047_vm10, %v2735_v28  ;;  %v2088_v33 = vpop.f32.mrf.mxu0 }
 0x26d   :  { %3288 = vmatmul.msk.f32.vlgmr.msrb.gmra.mxu0 %vm5048_vm11, %v2735_v28 }
 0x26e   :  { %3289 = vmatmul.msk.f32.vlgmr.msrb.gmra.mxu1 %vm5049_vm0, %v2735_v28 }
 0x271   :  { %v2068_v59 = vpop.f32.mrf.mxu3 }
 0x279   :  { %v2148_v1 = vpop.f32.mrf.mxu3 }
 0x281   :  { %v2228_v37 = vpop.f32.mrf.mxu3 }
 0x282   :  { %v4794_v25 = vpop.permute.xlu2 %3099 }
 0x290   :  { %v4768_v0 = vpop.f32.mrf.mxu0 }
 0x291   :  { %v4770_v16 = vpop.f32.mrf.mxu1 }
 0x297   :  { %v2208_v15 = vpop.f32.mrf.mxu2 }
 0x298   :  { %v4772_v14 = vpop.f32.mrf.mxu0 }
 0x299   :  { %v4774_v5 = vpop.f32.mrf.mxu1 }
 0x2a2   :  { %v4776_v21 = vpop.f32.mrf.mxu0 }
 0x2a3   :  { %v4778_v26 = vpop.f32.mrf.mxu1 }
 0x2a6   :  { %v4780_v57 = vpop.f32.mrf.mxu2  ;;  %v4782_v4 = vpop.f32.mrf.mxu3 }
 0x2aa   :  { %v2411_v36 = vpop.f32.mrf.mxu0 }
 0x2ab   :  { %v2431_v31 = vpop.f32.mrf.mxu1  ;;  %v2412_v54 = vadd.f32 %v2411_v36, %v2068_v59 }
 0x2ac   :  { %v2432_v53 = vadd.f32 %v2431_v31, %v2088_v33 }
 0x2ae   :  { %v4784_v43 = vpop.f32.mrf.mxu2  ;;  %v4786_v7 = vpop.f32.mrf.mxu3 }
 0x2b2   :  { %v2491_v44 = vpop.f32.mrf.mxu0 }
 0x2b3   :  { %v2511_v22 = vpop.f32.mrf.mxu1  ;;  %v2492_v9 = vadd.f32 %v2491_v44, %v2148_v1 }
 0x2b4   :  { %v2512_v59 = vadd.f32 %v2511_v22, %v4768_v0 }
 0x2b6   :  { %v2451_v60 = vpop.f32.mrf.mxu2  ;;  %v2471_v41 = vpop.f32.mrf.mxu3 }
 0x2b7   :  { %v2472_v28 = vadd.f32 %v2471_v41, %v2128_v17  ;;  %v2452_v62 = vadd.f32 %v2451_v60, %v2108_v39 }
 0x2ba   :  { %v2571_v45 = vpop.f32.mrf.mxu0 }
 0x2bb   :  { %v4788_v38 = vpop.f32.mrf.mxu1  ;;  %v2572_v58 = vadd.f32 %v2571_v45, %v2228_v37 }
 0x2be   :  { %v2531_v49 = vpop.f32.mrf.mxu2  ;;  %v2551_v34 = vpop.f32.mrf.mxu3 }
 0x2bf   :  { %v2552_v56 = vadd.f32 %v2551_v34, %v2208_v15  ;;  %v2532_v17 = vadd.f32 %v2531_v49, %v4770_v16 }
 0x2c2   :  { %v2651_v46 = vpop.f32.mrf.mxu0 }
 0x2c3   :  { %v4790_v48 = vpop.f32.mrf.mxu1  ;;  %v2652_v34 = vadd.f32 %v2651_v46, %v4782_v4 }
 0x2c6   :  { %v4792_v13 = vpop.f32.mrf.mxu2  ;;  %v2631_v27 = vpop.f32.mrf.mxu3 }
 0x2c7   :  { %v2632_v0 = vadd.f32 %v2631_v27, %v4780_v57 }
 0x2ca   :  { %v4796_v50 = vpop.f32.mrf.mxu0 }
 0x2cb   :  { %v2756_v23 = vpop.f32.mrf.mxu1 }
 0x2cc   :  { %v3079_v55 = vadd.f32 %v2756_v23, %v2412_v54 }
 0x2ce   :  { %v4798_v30 = vpop.f32.mrf.mxu2  ;;  %v3102_v6 = vadd.f32 %v4794_v25, %v3079_v55  ;;  %v4801_v20 = vpop.f32.mrf.mxu3 }
 0x2d0   :  { %v3119_v3 = vmax.f32 %v3102_v6, 0.0 }
 0x2d2   :  { %3136 = vst [vmem:[#allocation8] sm:$0xff] %v3119_v3  ;;  %v2816_v10 = vpop.f32.mrf.mxu0  ;;  %v2592_v3 = vadd.f32 %v4788_v38, %v4772_v14  ;;  %v2732_v14 = vadd.f32 %v4796_v50, %v4786_v7  ;;  %v2712_v38 = vadd.f32 %v4801_v20, %v4784_v43  ;;  %v2692_v7 = vadd.f32 %v4798_v30, %v4778_v26 }
 0x2d3   :  { %v2836_v18 = vpop.f32.mrf.mxu1  ;;  %v3082_v42 = vadd.f32 %v2816_v10, %v2472_v28 }
 0x2d4   :  { %v3083_v47 = vadd.f32 %v2836_v18, %v2492_v9  ;;  %v2612_v9 = vadd.f32 %v4792_v13, %v4774_v5 }
 0x2d5   :  { %v3105_v2 = vadd.f32 %v4794_v25, %v3082_v42 }
 0x2d6   :  { %v2776_v32 = vpop.f32.mrf.mxu2  ;;  %v3106_v8 = vadd.f32 %v4794_v25, %v3083_v47  ;;  %v2796_v11 = vpop.f32.mrf.mxu3 }
 0x2d7   :  { %v3080_v12 = vadd.f32 %v2776_v32, %v2432_v53  ;;  %v3122_v19 = vmax.f32 %v3105_v2, 0.0  ;;  %v3081_v29 = vadd.f32 %v2796_v11, %v2452_v62 }
 0x2d8   :  { %v3123_v52 = vmax.f32 %v3106_v8, 0.0 }
 0x2d9   :  { %v3103_v63 = vadd.f32 %v4794_v25, %v3080_v12  ;;  %3139 = vst [vmem:[#allocation8 + $0x18] sm:$0xff] %v3122_v19  ;;  %v3104_v51 = vadd.f32 %v4794_v25, %v3081_v29  ;;  %v2672_v12 = vadd.f32 %v4790_v48, %v4776_v21 }
 0x2da   :  { %3140 = vst [vmem:[#allocation8 + $0x20] sm:$0xff] %v3123_v52  ;;  %v2896_v61 = vpop.f32.mrf.mxu0 }
 0x2db   :  { %v3120_v35 = vmax.f32 %v3103_v63, 0.0  ;;  %v2916_v24 = vpop.f32.mrf.mxu1  ;;  %v3121_v40 = vmax.f32 %v3104_v51, 0.0  ;;  %v3086_v33 = vadd.f32 %v2896_v61, %v2552_v56 }
 0x2dc   :  { %v3087_v39 = vadd.f32 %v2916_v24, %v2572_v58 }
 0x2dd   :  { %3137 = vst [vmem:[#allocation8 + $0x8] sm:$0xff] %v3120_v35  ;;  %v3109_v37 = vadd.f32 %v4794_v25, %v3086_v33 }
 0x2de   :  { %3138 = vst [vmem:[#allocation8 + $0x10] sm:$0xff] %v3121_v40  ;;  %v2856_v1 = vpop.f32.mrf.mxu2  ;;  %v3110_v15 = vadd.f32 %v4794_v25, %v3087_v39  ;;  %v2876_v31 = vpop.f32.mrf.mxu3 }
 0x2df   :  { %v3084_v36 = vadd.f32 %v2856_v1, %v2512_v59  ;;  %v3126_v44 = vmax.f32 %v3109_v37, 0.0  ;;  %v3085_v41 = vadd.f32 %v2876_v31, %v2532_v17 }
 0x2e0   :  { %v3127_v60 = vmax.f32 %v3110_v15, 0.0 }
 0x2e1   :  { %v3107_v45 = vadd.f32 %v4794_v25, %v3084_v36  ;;  %3143 = vst [vmem:[#allocation8 + $0x38] sm:$0xff] %v3126_v44  ;;  %v3108_v16 = vadd.f32 %v4794_v25, %v3085_v41 }
 0x2e2   :  { %3144 = vst [vmem:[#allocation8 + $0x40] sm:$0xff] %v3127_v60  ;;  %v2976_v49 = vpop.f32.mrf.mxu0 }
 0x2e3   :  { %v3124_v22 = vmax.f32 %v3107_v45, 0.0  ;;  %v2996_v54 = vpop.f32.mrf.mxu1  ;;  %v3125_v23 = vmax.f32 %v3108_v16, 0.0  ;;  %v3090_v55 = vadd.f32 %v2976_v49, %v2632_v0 }
 0x2e4   :  { %v3091_v6 = vadd.f32 %v2996_v54, %v2652_v34 }
 0x2e5   :  { %3141 = vst [vmem:[#allocation8 + $0x28] sm:$0xff] %v3124_v22  ;;  %v3113_v57 = vadd.f32 %v4794_v25, %v3090_v55 }
 0x2e6   :  { %3142 = vst [vmem:[#allocation8 + $0x30] sm:$0xff] %v3125_v23  ;;  %v2936_v4 = vpop.f32.mrf.mxu2  ;;  %v3114_v46 = vadd.f32 %v4794_v25, %v3091_v6  ;;  %v2956_v28 = vpop.f32.mrf.mxu3 }
 0x2e7   :  { %v3088_v27 = vadd.f32 %v2936_v4, %v2592_v3  ;;  %v3130_v10 = vmax.f32 %v3113_v57, 0.0  ;;  %v3089_v42 = vadd.f32 %v2956_v28, %v2612_v9 }
 0x2e8   :  { %v3131_v18 = vmax.f32 %v3114_v46, 0.0 }
 0x2e9   :  { %v3111_v47 = vadd.f32 %v4794_v25, %v3088_v27  ;;  %3147 = vst [vmem:[#allocation8 + $0x58] sm:$0xff] %v3130_v10  ;;  %v3112_v5 = vadd.f32 %v4794_v25, %v3089_v42 }
 0x2ea   :  { %3148 = vst [vmem:[#allocation8 + $0x60] sm:$0xff] %v3131_v18  ;;  %v3056_v53 = vpop.f32.mrf.mxu0 }
 0x2eb   :  { %v3128_v13 = vmax.f32 %v3111_v47, 0.0  ;;  %v3076_v62 = vpop.f32.mrf.mxu1  ;;  %v3129_v32 = vmax.f32 %v3112_v5, 0.0  ;;  %v3094_v2 = vadd.f32 %v3056_v53, %v2712_v38 }
 0x2ec   :  { %v3095_v8 = vadd.f32 %v3076_v62, %v2732_v14 }
 0x2ed   :  { %3145 = vst [vmem:[#allocation8 + $0x48] sm:$0xff] %v3128_v13  ;;  %v3117_v43 = vadd.f32 %v4794_v25, %v3094_v2 }
 0x2ee   :  { %3146 = vst [vmem:[#allocation8 + $0x50] sm:$0xff] %v3129_v32  ;;  %v3016_v50 = vpop.f32.mrf.mxu2  ;;  %v3118_v20 = vadd.f32 %v4794_v25, %v3095_v8  ;;  %v3036_v19 = vpop.f32.mrf.mxu3 }
 0x2ef   :  { %v3092_v11 = vadd.f32 %v3016_v50, %v2672_v12  ;;  %v3134_v52 = vmax.f32 %v3117_v43, 0.0  ;;  %v3093_v63 = vadd.f32 %v3036_v19, %v2692_v7 }
 0x2f0   :  { %v3135_v29 = vmax.f32 %v3118_v20, 0.0 }
 0x2f1   :  { %v3115_v58 = vadd.f32 %v4794_v25, %v3092_v11  ;;  %3151 = vst [vmem:[#allocation8 + $0x78] sm:$0xff] %v3134_v52  ;;  %v3116_v21 = vadd.f32 %v4794_v25, %v3093_v63 }
 0x2f2   :  { %3152 = vst [vmem:[#allocation8 + $0x80] sm:$0xff] %v3135_v29 }
 0x2f3   :  { %v3132_v26 = vmax.f32 %v3115_v58, 0.0  ;;  %v3133_v48 = vmax.f32 %v3116_v21, 0.0 }
 0x2f5   :  { %3149 = vst [vmem:[#allocation8 + $0x68] sm:$0xff] %v3132_v26 }
 0x2f6   :  { %3150 = vst [vmem:[#allocation8 + $0x70] sm:$0xff] %v3133_v48 }
 0x2f7   :  { %3163 = dma.vmem_to_hbm [thread:$0]  %s3159_s12, 2176, %s3161_s15, [#allocation4]  }
 0x2f8   :  { %3557 = dma.done.wait [#allocation4], 2176  }
 0x2f9   :  { %3558 = vsyncadd [#allocation4], 4294965120 }
 0x2fa   :  { %3168 = vsyncpa [#allocation3], 1 }
 0x2fb   :  { %3169 = vsyncpa [#allocation6], 1 }
 0x2fc   :  { %3170 = vsyncpa [#allocation4], 1 }

</bundles_post_ra>
